<compile_context>
chip_gen: v7x
topology: tpu7x:2x2x1
jax: 0.10.0
libtpu: 0.0.40
codegen_flags: <defaults>
</compile_context>

<pallas_src>
import math

import jax
import jax.numpy as jnp
from jax import lax
from jax.experimental import pallas as pl
from jax.experimental.pallas import tpu as pltpu

D_MODEL = 16
D_INNER = 64
N_HEAD = 4
D_K = 4
D_V = 4
D_AUG = D_MODEL + 1          # d_model + ones column (bias folding)
LN_EPS = 1e-6                # ContiFormer EncoderLayer uses LayerNorm(d_model, eps=1e-6)


# ----------------------------------------------------------------------------
# Host-side helpers: interpolation matrix + parameter slab packing
# ----------------------------------------------------------------------------
def _interp_matrix(query, knots):
    """Dense [L, K] matrix W such that W @ values == linear interp of values at query."""
    K = knots.shape[0]
    q = jnp.clip(query, knots[0], knots[-1])
    seg = jnp.clip(jnp.searchsorted(knots, q, side="right") - 1, 0, K - 2)
    t_lo = knots[seg]
    t_hi = knots[seg + 1]
    w_hi = (q - t_lo) / (t_hi - t_lo)
    w_lo = 1.0 - w_hi
    L = query.shape[0]
    rows = jnp.arange(L)
    W = jnp.zeros((L, K), jnp.float32)
    W = W.at[rows, seg].add(w_lo.astype(jnp.float32))
    W = W.at[rows, seg + 1].add(w_hi.astype(jnp.float32))
    return W


def _build_slab(pieces):
    """Stack named 2-D pieces row-wise; each piece padded to an 8-row boundary,
    lanes padded to 128 -> every read is (8,128)-tile aligned."""
    offsets = {}
    rows = []
    r = 0
    for name, a in pieces:
        a = jnp.asarray(a, jnp.float32)
        if a.ndim == 1:
            a = a[None, :]
        nr, nc = a.shape
        offsets[name] = (r, nr, nc)
        pad_r = (-nr) % 8
        rows.append(jnp.pad(a, ((0, pad_r), (0, 128 - nc))))
        r += nr + pad_r
    return jnp.concatenate(rows, axis=0), offsets


# ----------------------------------------------------------------------------
# Fused kernel: embed + interpolate + encoder layer + lin_out (single step)
# ----------------------------------------------------------------------------
def _make_fused_kernel(off):
    def piece(ref, name):
        r, nr, nc = off[name]
        return ref[r:r + nr, 0:nc]

    def layer_norm(y, g, b):
        mu = jnp.mean(y, axis=-1, keepdims=True)
        var = jnp.mean((y - mu) ** 2, axis=-1, keepdims=True)
        return (y - mu) * lax.rsqrt(var + LN_EPS) * g + b

    def kernel(feat_ref, t_ref, slab_ref, o_ref):
        feat = feat_ref[...]                                  # (B*S, obs_dim+1), last col = 1
        t = t_ref[...]                                        # (B*S, 1)

        # lin_in (+bias via ones column) + sinusoidal temporal encoding
        w_in = piece(slab_ref, "w_in")                        # (obs_dim+1, 17)
        inv_pos = piece(slab_ref, "inv_pos")                  # (1, 17)
        phase = piece(slab_ref, "phase")                      # (1, 17)
        emb = jnp.dot(feat, w_in, preferred_element_type=jnp.float32)
        emb = emb + jnp.sin(t * inv_pos + phase)              # (B*S, 17); col 16 stays 1

        # torchcde linear interpolation as ONE block-diagonal MXU matmul
        w_interp = piece(slab_ref, "w_interp")                # (B*L, B*S)
        xs = jnp.dot(w_interp, emb, preferred_element_type=jnp.float32)   # (B*L, 17); col 16 = 1

        # multi-head self-attention, batch folded along sublanes (cross-batch masked);
        # scale + q/k/v biases folded into A_h, head-concat + wo folded into Wvo_h
        mask = piece(slab_ref, "mask")                        # (B*L, B*L)
        attn = None
        for h in range(N_HEAD):
            A = piece(slab_ref, f"A{h}")                      # (17, 17)
            Wvo = piece(slab_ref, f"Wvo{h}")                  # (17, 16)
            xa = jnp.dot(xs, A, preferred_element_type=jnp.float32)       # (B*L, 17)
            s = lax.dot_general(xa, xs, (((1,), (1,)), ((), ())),
                                preferred_element_type=jnp.float32) + mask
            s = s - jnp.max(s, axis=-1, keepdims=True)
            p = jnp.exp(s)
            p = p / jnp.sum(p, axis=-1, keepdims=True)
            v = jnp.dot(xs, Wvo, preferred_element_type=jnp.float32)      # (B*L, 16)
            pv = jnp.dot(p, v, preferred_element_type=jnp.float32)
            attn = pv if attn is None else attn + pv

        attn = attn + piece(slab_ref, "b_o")
        x0 = xs[:, 0:D_MODEL]                                 # residual (lane offset 0)
        h1 = layer_norm(x0 + attn, piece(slab_ref, "g1"), piece(slab_ref, "be1"))

        # position-wise feed-forward
        w1 = piece(slab_ref, "w1")
        b1 = piece(slab_ref, "b1")
        w2 = piece(slab_ref, "w2")
        b2 = piece(slab_ref, "b2")
        ff = jnp.maximum(jnp.dot(h1, w1, preferred_element_type=jnp.float32) + b1, 0.0)
        ff = jnp.dot(ff, w2, preferred_element_type=jnp.float32) + b2
        h2 = layer_norm(h1 + ff, piece(slab_ref, "g2"), piece(slab_ref, "be2"))

        # lin_out, lane-dense store (weights zero-padded to 128 lanes host-side)
        w_out = piece(slab_ref, "w_out")                      # (16, 128)
        b_out = piece(slab_ref, "b_out")                      # (1, 128)
        o_ref[...] = jnp.dot(h2, w_out, preferred_element_type=jnp.float32) + b_out

    return kernel


# ----------------------------------------------------------------------------
# Forward wrapper
# ----------------------------------------------------------------------------
def contiformer_forward(samples, orig_ts, params, tmax=6.0 * math.pi):
    samples = samples.astype(jnp.float32)
    B, S, C = samples.shape
    obs_dim = C - 1
    L = orig_ts.shape[0]
    BS, BL = B * S, B * L

    # split features / times wrapper-side (no lane slicing inside the kernel);
    # append a ones column so biases fold into the matmuls
    feat = samples[..., :obs_dim].reshape(BS, obs_dim)
    feat_aug = jnp.concatenate([feat, jnp.ones((BS, 1), jnp.float32)], axis=-1)
    t = samples[..., obs_dim:].reshape(BS, 1)

    # pad_input + linear interpolation folded into a dense [L, S] matrix,
    # then block-diagonal over the batch (rows sum to 1 -> ones column survives)
    knots = jnp.concatenate([samples[0, :, -1],
                             jnp.array([tmax], dtype=jnp.float32)])
    w_interp = _interp_matrix(orig_ts.astype(jnp.float32), knots)      # (L, S+1)
    w_eff = w_interp[:, :S].at[:, S - 1].add(w_interp[:, S])           # (L, S)
    w_bd = jnp.kron(jnp.eye(B, dtype=jnp.float32), w_eff)              # (B*L, B*S)

    # lin_in weights with bias row + ones-column passthrough
    w_in_aug = jnp.zeros((obs_dim + 1, D_AUG), jnp.float32)
    w_in_aug = w_in_aug.at[:obs_dim, :D_MODEL].set(params["w_in"])
    w_in_aug = w_in_aug.at[obs_dim, :D_MODEL].set(params["b_in"][0])
    w_in_aug = w_in_aug.at[obs_dim, D_MODEL].set(1.0)

    # temporal encoding constants (sin-only with per-lane phase); lane 16 -> 0
    inv_pos = jnp.concatenate([1.0 / params["pos_vec"],
                               jnp.zeros((1, 1), jnp.float32)], axis=-1)
    phase = jnp.concatenate(
        [(jnp.arange(D_MODEL) % 2).astype(jnp.float32)[None, :] * (math.pi / 2.0),
         jnp.zeros((1, 1), jnp.float32)], axis=-1)

    # per-head score / value-output matrices (scale, q/k/v biases, wo folded in)
    scale = 1.0 / math.sqrt(D_K)
    head_pieces = []
    for h in range(N_HEAD):
        wq = jnp.concatenate([params["wq"][:, h * D_K:(h + 1) * D_K],
                              params["bq"][:, h * D_K:(h + 1) * D_K]], axis=0)   # (17,4)
        wk = jnp.concatenate([params["wk"][:, h * D_K:(h + 1) * D_K],
                              params["bk"][:, h * D_K:(h + 1) * D_K]], axis=0)   # (17,4)
        wv = jnp.concatenate([params["wv"][:, h * D_V:(h + 1) * D_V],
                              params["bv"][:, h * D_V:(h + 1) * D_V]], axis=0)   # (17,4)
        wo = params["wo"][h * D_V:(h + 1) * D_V, :]                              # (4,16)
        head_pieces.append((f"A{h}", scale * (wq @ wk.T)))                       # (17,17)
        head_pieces.append((f"Wvo{h}", wv @ wo))                                 # (17,16)

    # cross-batch mask (batch rows stacked along sublanes in one attention)
    mask = (1.0 - jnp.kron(jnp.eye(B, dtype=jnp.float32),
                           jnp.ones((L, L), jnp.float32))) * (-1e9)              # (B*L, B*L)

    # lane-dense lin_out (pad to 128 output lanes, slice in the wrapper)
    w_out_pad = jnp.zeros((D_MODEL, 128), jnp.float32).at[:, :obs_dim].set(params["wout"])
    b_out_pad = jnp.zeros((1, 128), jnp.float32).at[:, :obs_dim].set(params["bout"])

    slab, off = _build_slab([
        ("w_in", w_in_aug), ("inv_pos", inv_pos), ("phase", phase),
        ("w_interp", w_bd), ("mask", mask),
        *head_pieces,
        ("b_o", params["bo"]),
        ("g1", params["g1"]), ("be1", params["be1"]),
        ("w1", params["w1"]), ("b1", params["b1"]),
        ("w2", params["w2"]), ("b2", params["b2"]),
        ("g2", params["g2"]), ("be2", params["be2"]),
        ("w_out", w_out_pad), ("b_out", b_out_pad),
    ])
    R = slab.shape[0]

    kernel = _make_fused_kernel(off)
    out = pl.pallas_call(
        kernel,
        out_shape=jax.ShapeDtypeStruct((BL, 128), jnp.float32),
        grid=(1,),   # single fat step: whole batch per step (overhead-bound size)
        in_specs=[
            pl.BlockSpec((BS, obs_dim + 1), lambda g: (0, 0)),
            pl.BlockSpec((BS, 1), lambda g: (0, 0)),
            pl.BlockSpec((R, 128), lambda g: (0, 0)),
        ],
        out_specs=pl.BlockSpec((BL, 128), lambda g: (0, 0)),
        compiler_params=pltpu.CompilerParams(dimension_semantics=("arbitrary",)),
    )(feat_aug, t, slab)
    return out[:, :obs_dim].reshape(B, L, obs_dim)


# ----------------------------------------------------------------------------
# Deterministic parameter init (PyTorch-Linear-style uniform)
# ----------------------------------------------------------------------------
def _lin(key, fan_in, shape):
    bound = 1.0 / math.sqrt(fan_in)
    return jax.random.uniform(key, shape, jnp.float32, -bound, bound)


def init_params(key, obs_dim):
    ks = jax.random.split(key, 20)
    return {
        "w_in": _lin(ks[0], obs_dim, (obs_dim, D_MODEL)),
        "b_in": _lin(ks[1], obs_dim, (1, D_MODEL)),
        "wq": _lin(ks[2], D_MODEL, (D_MODEL, N_HEAD * D_K)),
        "bq": _lin(ks[3], D_MODEL, (1, N_HEAD * D_K)),
        "wk": _lin(ks[4], D_MODEL, (D_MODEL, N_HEAD * D_K)),
        "bk": _lin(ks[5], D_MODEL, (1, N_HEAD * D_K)),
        "wv": _lin(ks[6], D_MODEL, (D_MODEL, N_HEAD * D_V)),
        "bv": _lin(ks[7], D_MODEL, (1, N_HEAD * D_V)),
        "wo": _lin(ks[8], N_HEAD * D_V, (N_HEAD * D_V, D_MODEL)),
        "bo": _lin(ks[9], N_HEAD * D_V, (1, D_MODEL)),
        "g1": jnp.ones((1, D_MODEL), jnp.float32),
        "be1": jnp.zeros((1, D_MODEL), jnp.float32),
        "w1": _lin(ks[10], D_MODEL, (D_MODEL, D_INNER)),
        "b1": _lin(ks[11], D_MODEL, (1, D_INNER)),
        "w2": _lin(ks[12], D_INNER, (D_INNER, D_MODEL)),
        "b2": _lin(ks[13], D_INNER, (1, D_MODEL)),
        "g2": jnp.ones((1, D_MODEL), jnp.float32),
        "be2": jnp.zeros((1, D_MODEL), jnp.float32),
        "wout": _lin(ks[14], D_MODEL, (D_MODEL, obs_dim)),
        "bout": _lin(ks[15], D_MODEL, (1, obs_dim)),
        "pos_vec": jnp.array(
            [[math.pow(10000.0, 2.0 * (i // 2) / D_MODEL) for i in range(D_MODEL)]],
            dtype=jnp.float32),
    }


if __name__ == "__main__":
    B, S, obs_dim, L = 2, 8, 4, 8
    tmax = 6.0 * math.pi

    key = jax.random.PRNGKey(0)
    k_feat, k_params = jax.random.split(key)

    # increasing observation times shared across the batch (interp knots)
    times = jnp.linspace(0.0, 0.8 * tmax, S, dtype=jnp.float32)
    feat = jax.random.normal(k_feat, (B, S, obs_dim), dtype=jnp.float32)
    samples = jnp.concatenate(
        [feat, jnp.broadcast_to(times[None, :, None], (B, S, 1))], axis=-1)  # [B,S,5]
    orig_ts = jnp.linspace(0.05 * tmax, 0.95 * tmax, L, dtype=jnp.float32)   # [L]

    params = init_params(k_params, obs_dim)

    fwd = jax.jit(lambda s, ts: contiformer_forward(s, ts, params, tmax=tmax))
    out = jax.block_until_ready(fwd(samples, orig_ts))
    assert out.shape == (B, L, obs_dim), out.shape
    assert bool(jnp.all(jnp.isfinite(out)))
    print("KERNEL_OK")
</pallas_src>

<mosaic_0001>
module attributes {stable_mosaic.version = 11 : i64} {
  func.func @kernel(%arg0: i32, %arg1: memref<16x5xf32, #tpu.memory_space<vmem>>, %arg2: memref<16x1xf32, #tpu.memory_space<vmem>>, %arg3: memref<408x128xf32, #tpu.memory_space<vmem>>, %arg4: memref<16x128xf32, #tpu.memory_space<vmem>>) attributes {dimension_semantics = [#tpu.dimension_semantics<arbitrary>], iteration_bounds = array<i64: 1>, scalar_prefetch = 0 : i64, scratch_operands = 0 : i64, tpu.core_type = #tpu.core_type<tc>, window_params = [{pipeline_mode = #tpu.pipeline_mode<synchronous>, transform_indices = @transform_0, window_bounds = array<i64: 16, 5>}, {pipeline_mode = #tpu.pipeline_mode<synchronous>, transform_indices = @transform_1, window_bounds = array<i64: 16, 1>}, {pipeline_mode = #tpu.pipeline_mode<synchronous>, transform_indices = @transform_2, window_bounds = array<i64: 408, 128>}, {pipeline_mode = #tpu.pipeline_mode<synchronous>, transform_indices = @transform_3, window_bounds = array<i64: 16, 128>}]} {
    %c0 = arith.constant 0 : index
    %c0_0 = arith.constant 0 : index
    %0 = vector.load %arg1[%c0, %c0_0] : memref<16x5xf32, #tpu.memory_space<vmem>>, vector<16x5xf32>
    %c0_1 = arith.constant 0 : index
    %c0_2 = arith.constant 0 : index
    %1 = vector.load %arg2[%c0_1, %c0_2] : memref<16x1xf32, #tpu.memory_space<vmem>>, vector<16x1xf32>
    %c0_3 = arith.constant 0 : index
    %c0_4 = arith.constant 0 : index
    %2 = vector.load %arg3[%c0_3, %c0_4] : memref<408x128xf32, #tpu.memory_space<vmem>>, vector<5x17xf32>
    %c8 = arith.constant 8 : index
    %c0_5 = arith.constant 0 : index
    %3 = vector.load %arg3[%c8, %c0_5] : memref<408x128xf32, #tpu.memory_space<vmem>>, vector<1x17xf32>
    %c16 = arith.constant 16 : index
    %c0_6 = arith.constant 0 : index
    %4 = vector.load %arg3[%c16, %c0_6] : memref<408x128xf32, #tpu.memory_space<vmem>>, vector<1x17xf32>
    %cst = arith.constant dense<0.000000e+00> : vector<16x17xf32>
    %5 = tpu.matmul %0, %2, %cst {dimension_numbers = #tpu.dot_dimension_numbers<[1], [0], [0], [1], [0, 0, 1, 1], [], []>} : vector<16x5xf32>, vector<5x17xf32>, vector<16x17xf32> -> vector<16x17xf32>
    %6 = vector.broadcast %1 : vector<16x1xf32> to vector<16x17xf32>
    %7 = vector.broadcast %3 : vector<1x17xf32> to vector<16x17xf32>
    %8 = arith.mulf %6, %7 : vector<16x17xf32>
    %9 = vector.broadcast %4 : vector<1x17xf32> to vector<16x17xf32>
    %10 = arith.addf %8, %9 : vector<16x17xf32>
    %11 = math.sin %10 : vector<16x17xf32>
    %12 = arith.addf %5, %11 : vector<16x17xf32>
    %c24 = arith.constant 24 : index
    %c0_7 = arith.constant 0 : index
    %13 = vector.load %arg3[%c24, %c0_7] : memref<408x128xf32, #tpu.memory_space<vmem>>, vector<16x16xf32>
    %cst_8 = arith.constant dense<0.000000e+00> : vector<16x17xf32>
    %14 = tpu.matmul %13, %12, %cst_8 {dimension_numbers = #tpu.dot_dimension_numbers<[1], [0], [0], [1], [0, 0, 1, 1], [], []>} : vector<16x16xf32>, vector<16x17xf32>, vector<16x17xf32> -> vector<16x17xf32>
    %c40 = arith.constant 40 : index
    %c0_9 = arith.constant 0 : index
    %15 = vector.load %arg3[%c40, %c0_9] : memref<408x128xf32, #tpu.memory_space<vmem>>, vector<16x16xf32>
    %c56 = arith.constant 56 : index
    %c0_10 = arith.constant 0 : index
    %16 = vector.load %arg3[%c56, %c0_10] : memref<408x128xf32, #tpu.memory_space<vmem>>, vector<17x17xf32>
    %c80 = arith.constant 80 : index
    %c0_11 = arith.constant 0 : index
    %17 = vector.load %arg3[%c80, %c0_11] : memref<408x128xf32, #tpu.memory_space<vmem>>, vector<17x16xf32>
    %cst_12 = arith.constant dense<0.000000e+00> : vector<16x17xf32>
    %18 = tpu.matmul %14, %16, %cst_12 {dimension_numbers = #tpu.dot_dimension_numbers<[1], [0], [0], [1], [0, 0, 1, 1], [], []>} : vector<16x17xf32>, vector<17x17xf32>, vector<16x17xf32> -> vector<16x17xf32>
    %cst_13 = arith.constant dense<0.000000e+00> : vector<16x16xf32>
    %19 = tpu.matmul %18, %14, %cst_13 {dimension_numbers = #tpu.dot_dimension_numbers<[1], [1], [0], [0], [0, 0, 1, 0], [], []>} : vector<16x17xf32>, vector<16x17xf32>, vector<16x16xf32> -> vector<16x16xf32>
    %20 = arith.addf %19, %15 : vector<16x16xf32>
    %cst_14 = arith.constant dense<0xFF800000> : vector<16xf32>
    %21 = vector.multi_reduction <maximumf>, %20, %cst_14 [1] : vector<16x16xf32> to vector<16xf32>
    %22 = vector.shape_cast %21 : vector<16xf32> to vector<16x1xf32>
    %23 = vector.broadcast %22 : vector<16x1xf32> to vector<16x16xf32>
    %24 = arith.subf %20, %23 : vector<16x16xf32>
    %25 = math.exp %24 : vector<16x16xf32>
    %cst_15 = arith.constant dense<0.000000e+00> : vector<16xf32>
    %26 = vector.multi_reduction <add>, %25, %cst_15 [1] : vector<16x16xf32> to vector<16xf32>
    %27 = vector.shape_cast %26 : vector<16xf32> to vector<16x1xf32>
    %28 = vector.broadcast %27 : vector<16x1xf32> to vector<16x16xf32>
    %29 = arith.divf %25, %28 : vector<16x16xf32>
    %cst_16 = arith.constant dense<0.000000e+00> : vector<16x16xf32>
    %30 = tpu.matmul %14, %17, %cst_16 {dimension_numbers = #tpu.dot_dimension_numbers<[1], [0], [0], [1], [0, 0, 1, 1], [], []>} : vector<16x17xf32>, vector<17x16xf32>, vector<16x16xf32> -> vector<16x16xf32>
    %cst_17 = arith.constant dense<0.000000e+00> : vector<16x16xf32>
    %31 = tpu.matmul %29, %30, %cst_17 {dimension_numbers = #tpu.dot_dimension_numbers<[1], [0], [0], [1], [0, 0, 1, 1], [], []>} : vector<16x16xf32>, vector<16x16xf32>, vector<16x16xf32> -> vector<16x16xf32>
    %c104 = arith.constant 104 : index
    %c0_18 = arith.constant 0 : index
    %32 = vector.load %arg3[%c104, %c0_18] : memref<408x128xf32, #tpu.memory_space<vmem>>, vector<17x17xf32>
    %c128 = arith.constant 128 : index
    %c0_19 = arith.constant 0 : index
    %33 = vector.load %arg3[%c128, %c0_19] : memref<408x128xf32, #tpu.memory_space<vmem>>, vector<17x16xf32>
    %cst_20 = arith.constant dense<0.000000e+00> : vector<16x17xf32>
    %34 = tpu.matmul %14, %32, %cst_20 {dimension_numbers = #tpu.dot_dimension_numbers<[1], [0], [0], [1], [0, 0, 1, 1], [], []>} : vector<16x17xf32>, vector<17x17xf32>, vector<16x17xf32> -> vector<16x17xf32>
    %cst_21 = arith.constant dense<0.000000e+00> : vector<16x16xf32>
    %35 = tpu.matmul %34, %14, %cst_21 {dimension_numbers = #tpu.dot_dimension_numbers<[1], [1], [0], [0], [0, 0, 1, 0], [], []>} : vector<16x17xf32>, vector<16x17xf32>, vector<16x16xf32> -> vector<16x16xf32>
    %36 = arith.addf %35, %15 : vector<16x16xf32>
    %cst_22 = arith.constant dense<0xFF800000> : vector<16xf32>
    %37 = vector.multi_reduction <maximumf>, %36, %cst_22 [1] : vector<16x16xf32> to vector<16xf32>
    %38 = vector.shape_cast %37 : vector<16xf32> to vector<16x1xf32>
    %39 = vector.broadcast %38 : vector<16x1xf32> to vector<16x16xf32>
    %40 = arith.subf %36, %39 : vector<16x16xf32>
    %41 = math.exp %40 : vector<16x16xf32>
    %cst_23 = arith.constant dense<0.000000e+00> : vector<16xf32>
    %42 = vector.multi_reduction <add>, %41, %cst_23 [1] : vector<16x16xf32> to vector<16xf32>
    %43 = vector.shape_cast %42 : vector<16xf32> to vector<16x1xf32>
    %44 = vector.broadcast %43 : vector<16x1xf32> to vector<16x16xf32>
    %45 = arith.divf %41, %44 : vector<16x16xf32>
    %cst_24 = arith.constant dense<0.000000e+00> : vector<16x16xf32>
    %46 = tpu.matmul %14, %33, %cst_24 {dimension_numbers = #tpu.dot_dimension_numbers<[1], [0], [0], [1], [0, 0, 1, 1], [], []>} : vector<16x17xf32>, vector<17x16xf32>, vector<16x16xf32> -> vector<16x16xf32>
    %cst_25 = arith.constant dense<0.000000e+00> : vector<16x16xf32>
    %47 = tpu.matmul %45, %46, %cst_25 {dimension_numbers = #tpu.dot_dimension_numbers<[1], [0], [0], [1], [0, 0, 1, 1], [], []>} : vector<16x16xf32>, vector<16x16xf32>, vector<16x16xf32> -> vector<16x16xf32>
    %48 = arith.addf %31, %47 : vector<16x16xf32>
    %c152 = arith.constant 152 : index
    %c0_26 = arith.constant 0 : index
    %49 = vector.load %arg3[%c152, %c0_26] : memref<408x128xf32, #tpu.memory_space<vmem>>, vector<17x17xf32>
    %c176 = arith.constant 176 : index
    %c0_27 = arith.constant 0 : index
    %50 = vector.load %arg3[%c176, %c0_27] : memref<408x128xf32, #tpu.memory_space<vmem>>, vector<17x16xf32>
    %cst_28 = arith.constant dense<0.000000e+00> : vector<16x17xf32>
    %51 = tpu.matmul %14, %49, %cst_28 {dimension_numbers = #tpu.dot_dimension_numbers<[1], [0], [0], [1], [0, 0, 1, 1], [], []>} : vector<16x17xf32>, vector<17x17xf32>, vector<16x17xf32> -> vector<16x17xf32>
    %cst_29 = arith.constant dense<0.000000e+00> : vector<16x16xf32>
    %52 = tpu.matmul %51, %14, %cst_29 {dimension_numbers = #tpu.dot_dimension_numbers<[1], [1], [0], [0], [0, 0, 1, 0], [], []>} : vector<16x17xf32>, vector<16x17xf32>, vector<16x16xf32> -> vector<16x16xf32>
    %53 = arith.addf %52, %15 : vector<16x16xf32>
    %cst_30 = arith.constant dense<0xFF800000> : vector<16xf32>
    %54 = vector.multi_reduction <maximumf>, %53, %cst_30 [1] : vector<16x16xf32> to vector<16xf32>
    %55 = vector.shape_cast %54 : vector<16xf32> to vector<16x1xf32>
    %56 = vector.broadcast %55 : vector<16x1xf32> to vector<16x16xf32>
    %57 = arith.subf %53, %56 : vector<16x16xf32>
    %58 = math.exp %57 : vector<16x16xf32>
    %cst_31 = arith.constant dense<0.000000e+00> : vector<16xf32>
    %59 = vector.multi_reduction <add>, %58, %cst_31 [1] : vector<16x16xf32> to vector<16xf32>
    %60 = vector.shape_cast %59 : vector<16xf32> to vector<16x1xf32>
    %61 = vector.broadcast %60 : vector<16x1xf32> to vector<16x16xf32>
    %62 = arith.divf %58, %61 : vector<16x16xf32>
    %cst_32 = arith.constant dense<0.000000e+00> : vector<16x16xf32>
    %63 = tpu.matmul %14, %50, %cst_32 {dimension_numbers = #tpu.dot_dimension_numbers<[1], [0], [0], [1], [0, 0, 1, 1], [], []>} : vector<16x17xf32>, vector<17x16xf32>, vector<16x16xf32> -> vector<16x16xf32>
    %cst_33 = arith.constant dense<0.000000e+00> : vector<16x16xf32>
    %64 = tpu.matmul %62, %63, %cst_33 {dimension_numbers = #tpu.dot_dimension_numbers<[1], [0], [0], [1], [0, 0, 1, 1], [], []>} : vector<16x16xf32>, vector<16x16xf32>, vector<16x16xf32> -> vector<16x16xf32>
    %65 = arith.addf %48, %64 : vector<16x16xf32>
    %c200 = arith.constant 200 : index
    %c0_34 = arith.constant 0 : index
    %66 = vector.load %arg3[%c200, %c0_34] : memref<408x128xf32, #tpu.memory_space<vmem>>, vector<17x17xf32>
    %c224 = arith.constant 224 : index
    %c0_35 = arith.constant 0 : index
    %67 = vector.load %arg3[%c224, %c0_35] : memref<408x128xf32, #tpu.memory_space<vmem>>, vector<17x16xf32>
    %cst_36 = arith.constant dense<0.000000e+00> : vector<16x17xf32>
    %68 = tpu.matmul %14, %66, %cst_36 {dimension_numbers = #tpu.dot_dimension_numbers<[1], [0], [0], [1], [0, 0, 1, 1], [], []>} : vector<16x17xf32>, vector<17x17xf32>, vector<16x17xf32> -> vector<16x17xf32>
    %cst_37 = arith.constant dense<0.000000e+00> : vector<16x16xf32>
    %69 = tpu.matmul %68, %14, %cst_37 {dimension_numbers = #tpu.dot_dimension_numbers<[1], [1], [0], [0], [0, 0, 1, 0], [], []>} : vector<16x17xf32>, vector<16x17xf32>, vector<16x16xf32> -> vector<16x16xf32>
    %70 = arith.addf %69, %15 : vector<16x16xf32>
    %cst_38 = arith.constant dense<0xFF800000> : vector<16xf32>
    %71 = vector.multi_reduction <maximumf>, %70, %cst_38 [1] : vector<16x16xf32> to vector<16xf32>
    %72 = vector.shape_cast %71 : vector<16xf32> to vector<16x1xf32>
    %73 = vector.broadcast %72 : vector<16x1xf32> to vector<16x16xf32>
    %74 = arith.subf %70, %73 : vector<16x16xf32>
    %75 = math.exp %74 : vector<16x16xf32>
    %cst_39 = arith.constant dense<0.000000e+00> : vector<16xf32>
    %76 = vector.multi_reduction <add>, %75, %cst_39 [1] : vector<16x16xf32> to vector<16xf32>
    %77 = vector.shape_cast %76 : vector<16xf32> to vector<16x1xf32>
    %78 = vector.broadcast %77 : vector<16x1xf32> to vector<16x16xf32>
    %79 = arith.divf %75, %78 : vector<16x16xf32>
    %cst_40 = arith.constant dense<0.000000e+00> : vector<16x16xf32>
    %80 = tpu.matmul %14, %67, %cst_40 {dimension_numbers = #tpu.dot_dimension_numbers<[1], [0], [0], [1], [0, 0, 1, 1], [], []>} : vector<16x17xf32>, vector<17x16xf32>, vector<16x16xf32> -> vector<16x16xf32>
    %cst_41 = arith.constant dense<0.000000e+00> : vector<16x16xf32>
    %81 = tpu.matmul %79, %80, %cst_41 {dimension_numbers = #tpu.dot_dimension_numbers<[1], [0], [0], [1], [0, 0, 1, 1], [], []>} : vector<16x16xf32>, vector<16x16xf32>, vector<16x16xf32> -> vector<16x16xf32>
    %82 = arith.addf %65, %81 : vector<16x16xf32>
    %c248 = arith.constant 248 : index
    %c0_42 = arith.constant 0 : index
    %83 = vector.load %arg3[%c248, %c0_42] : memref<408x128xf32, #tpu.memory_space<vmem>>, vector<1x16xf32>
    %84 = vector.broadcast %83 : vector<1x16xf32> to vector<16x16xf32>
    %85 = arith.addf %82, %84 : vector<16x16xf32>
    %86 = vector.extract_strided_slice %14 {offsets = [0, 0], sizes = [16, 16], strides = [1, 1]} : vector<16x17xf32> to vector<16x16xf32>
    %87 = arith.addf %86, %85 : vector<16x16xf32>
    %c256 = arith.constant 256 : index
    %c0_43 = arith.constant 0 : index
    %88 = vector.load %arg3[%c256, %c0_43] : memref<408x128xf32, #tpu.memory_space<vmem>>, vector<1x16xf32>
    %c264 = arith.constant 264 : index
    %c0_44 = arith.constant 0 : index
    %89 = vector.load %arg3[%c264, %c0_44] : memref<408x128xf32, #tpu.memory_space<vmem>>, vector<1x16xf32>
    %cst_45 = arith.constant dense<0.000000e+00> : vector<16xf32>
    %90 = vector.multi_reduction <add>, %87, %cst_45 [1] : vector<16x16xf32> to vector<16xf32>
    %91 = vector.shape_cast %90 : vector<16xf32> to vector<16x1xf32>
    %cst_46 = arith.constant 1.600000e+01 : f32
    %92 = vector.broadcast %cst_46 : f32 to vector<16x1xf32>
    %93 = arith.divf %91, %92 : vector<16x1xf32>
    %94 = vector.broadcast %93 : vector<16x1xf32> to vector<16x16xf32>
    %95 = arith.subf %87, %94 : vector<16x16xf32>
    %96 = arith.mulf %95, %95 : vector<16x16xf32>
    %cst_47 = arith.constant dense<0.000000e+00> : vector<16xf32>
    %97 = vector.multi_reduction <add>, %96, %cst_47 [1] : vector<16x16xf32> to vector<16xf32>
    %98 = vector.shape_cast %97 : vector<16xf32> to vector<16x1xf32>
    %cst_48 = arith.constant 1.600000e+01 : f32
    %99 = vector.broadcast %cst_48 : f32 to vector<16x1xf32>
    %100 = arith.divf %98, %99 : vector<16x1xf32>
    %101 = vector.broadcast %93 : vector<16x1xf32> to vector<16x16xf32>
    %102 = arith.subf %87, %101 : vector<16x16xf32>
    %cst_49 = arith.constant 9.99999997E-7 : f32
    %103 = vector.broadcast %cst_49 : f32 to vector<16x1xf32>
    %104 = arith.addf %100, %103 : vector<16x1xf32>
    %105 = math.rsqrt %104 : vector<16x1xf32>
    %106 = vector.broadcast %105 : vector<16x1xf32> to vector<16x16xf32>
    %107 = arith.mulf %102, %106 : vector<16x16xf32>
    %108 = vector.broadcast %88 : vector<1x16xf32> to vector<16x16xf32>
    %109 = arith.mulf %107, %108 : vector<16x16xf32>
    %110 = vector.broadcast %89 : vector<1x16xf32> to vector<16x16xf32>
    %111 = arith.addf %109, %110 : vector<16x16xf32>
    %c272 = arith.constant 272 : index
    %c0_50 = arith.constant 0 : index
    %112 = vector.load %arg3[%c272, %c0_50] : memref<408x128xf32, #tpu.memory_space<vmem>>, vector<16x64xf32>
    %c288 = arith.constant 288 : index
    %c0_51 = arith.constant 0 : index
    %113 = vector.load %arg3[%c288, %c0_51] : memref<408x128xf32, #tpu.memory_space<vmem>>, vector<1x64xf32>
    %c296 = arith.constant 296 : index
    %c0_52 = arith.constant 0 : index
    %114 = vector.load %arg3[%c296, %c0_52] : memref<408x128xf32, #tpu.memory_space<vmem>>, vector<64x16xf32>
    %c360 = arith.constant 360 : index
    %c0_53 = arith.constant 0 : index
    %115 = vector.load %arg3[%c360, %c0_53] : memref<408x128xf32, #tpu.memory_space<vmem>>, vector<1x16xf32>
    %cst_54 = arith.constant dense<0.000000e+00> : vector<16x64xf32>
    %116 = tpu.matmul %111, %112, %cst_54 {dimension_numbers = #tpu.dot_dimension_numbers<[1], [0], [0], [1], [0, 0, 1, 1], [], []>} : vector<16x16xf32>, vector<16x64xf32>, vector<16x64xf32> -> vector<16x64xf32>
    %117 = vector.broadcast %113 : vector<1x64xf32> to vector<16x64xf32>
    %118 = arith.addf %116, %117 : vector<16x64xf32>
    %cst_55 = arith.constant 0.000000e+00 : f32
    %119 = vector.broadcast %cst_55 : f32 to vector<16x64xf32>
    %120 = arith.maximumf %118, %119 : vector<16x64xf32>
    %cst_56 = arith.constant dense<0.000000e+00> : vector<16x16xf32>
    %121 = tpu.matmul %120, %114, %cst_56 {dimension_numbers = #tpu.dot_dimension_numbers<[1], [0], [0], [1], [0, 0, 1, 1], [], []>} : vector<16x64xf32>, vector<64x16xf32>, vector<16x16xf32> -> vector<16x16xf32>
    %122 = vector.broadcast %115 : vector<1x16xf32> to vector<16x16xf32>
    %123 = arith.addf %121, %122 : vector<16x16xf32>
    %124 = arith.addf %111, %123 : vector<16x16xf32>
    %c368 = arith.constant 368 : index
    %c0_57 = arith.constant 0 : index
    %125 = vector.load %arg3[%c368, %c0_57] : memref<408x128xf32, #tpu.memory_space<vmem>>, vector<1x16xf32>
    %c376 = arith.constant 376 : index
    %c0_58 = arith.constant 0 : index
    %126 = vector.load %arg3[%c376, %c0_58] : memref<408x128xf32, #tpu.memory_space<vmem>>, vector<1x16xf32>
    %cst_59 = arith.constant dense<0.000000e+00> : vector<16xf32>
    %127 = vector.multi_reduction <add>, %124, %cst_59 [1] : vector<16x16xf32> to vector<16xf32>
    %128 = vector.shape_cast %127 : vector<16xf32> to vector<16x1xf32>
    %cst_60 = arith.constant 1.600000e+01 : f32
    %129 = vector.broadcast %cst_60 : f32 to vector<16x1xf32>
    %130 = arith.divf %128, %129 : vector<16x1xf32>
    %131 = vector.broadcast %130 : vector<16x1xf32> to vector<16x16xf32>
    %132 = arith.subf %124, %131 : vector<16x16xf32>
    %133 = arith.mulf %132, %132 : vector<16x16xf32>
    %cst_61 = arith.constant dense<0.000000e+00> : vector<16xf32>
    %134 = vector.multi_reduction <add>, %133, %cst_61 [1] : vector<16x16xf32> to vector<16xf32>
    %135 = vector.shape_cast %134 : vector<16xf32> to vector<16x1xf32>
    %cst_62 = arith.constant 1.600000e+01 : f32
    %136 = vector.broadcast %cst_62 : f32 to vector<16x1xf32>
    %137 = arith.divf %135, %136 : vector<16x1xf32>
    %138 = vector.broadcast %130 : vector<16x1xf32> to vector<16x16xf32>
    %139 = arith.subf %124, %138 : vector<16x16xf32>
    %cst_63 = arith.constant 9.99999997E-7 : f32
    %140 = vector.broadcast %cst_63 : f32 to vector<16x1xf32>
    %141 = arith.addf %137, %140 : vector<16x1xf32>
    %142 = math.rsqrt %141 : vector<16x1xf32>
    %143 = vector.broadcast %142 : vector<16x1xf32> to vector<16x16xf32>
    %144 = arith.mulf %139, %143 : vector<16x16xf32>
    %145 = vector.broadcast %125 : vector<1x16xf32> to vector<16x16xf32>
    %146 = arith.mulf %144, %145 : vector<16x16xf32>
    %147 = vector.broadcast %126 : vector<1x16xf32> to vector<16x16xf32>
    %148 = arith.addf %146, %147 : vector<16x16xf32>
    %c384 = arith.constant 384 : index
    %c0_64 = arith.constant 0 : index
    %149 = vector.load %arg3[%c384, %c0_64] : memref<408x128xf32, #tpu.memory_space<vmem>>, vector<16x128xf32>
    %c400 = arith.constant 400 : index
    %c0_65 = arith.constant 0 : index
    %150 = vector.load %arg3[%c400, %c0_65] : memref<408x128xf32, #tpu.memory_space<vmem>>, vector<1x128xf32>
    %cst_66 = arith.constant dense<0.000000e+00> : vector<16x128xf32>
    %151 = tpu.matmul %148, %149, %cst_66 {dimension_numbers = #tpu.dot_dimension_numbers<[1], [0], [0], [1], [0, 0, 1, 1], [], []>} : vector<16x16xf32>, vector<16x128xf32>, vector<16x128xf32> -> vector<16x128xf32>
    %152 = vector.broadcast %150 : vector<1x128xf32> to vector<16x128xf32>
    %153 = arith.addf %151, %152 : vector<16x128xf32>
    %c0_67 = arith.constant 0 : index
    %c0_68 = arith.constant 0 : index
    %154 = vector.load %arg4[%c0_67, %c0_68] : memref<16x128xf32, #tpu.memory_space<vmem>>, vector<16x128xf32>
    tpu.vector_store %arg4[%c0_67, %c0_68], %153 {strides = array<i32>} : memref<16x128xf32, #tpu.memory_space<vmem>>, vector<16x128xf32>,
    return
  }
  func.func @transform_0(%arg0: i32) -> (i32, i32) {
    %c0_i32 = arith.constant 0 : i32
    %c0_i32_0 = arith.constant 0 : i32
    %c0_i32_1 = arith.constant 0 : i32
    return %c0_i32, %c0_i32_0 : i32, i32
  }
  func.func @transform_1(%arg0: i32) -> (i32, i32) {
    %c0_i32 = arith.constant 0 : i32
    %c0_i32_0 = arith.constant 0 : i32
    %c0_i32_1 = arith.constant 0 : i32
    return %c0_i32, %c0_i32_0 : i32, i32
  }
  func.func @transform_2(%arg0: i32) -> (i32, i32) {
    %c0_i32 = arith.constant 0 : i32
    %c0_i32_0 = arith.constant 0 : i32
    %c0_i32_1 = arith.constant 0 : i32
    return %c0_i32, %c0_i32_0 : i32, i32
  }
  func.func @transform_3(%arg0: i32) -> (i32, i32) {
    %c0_i32 = arith.constant 0 : i32
    %c0_i32_0 = arith.constant 0 : i32
    %c0_i32_1 = arith.constant 0 : i32
    return %c0_i32, %c0_i32_0 : i32, i32
  }
}

</mosaic_0001>

<bundles_post_ra>
// kernel: custom-call.4
= control target key start
LH: loop header
LB: loop body
LE: loop exit
PB: predicated region body
PF: predicated region fallthrough
CT: control target
= control target key end

     0   :  { %s6_s0 = inlined_call_operand.vmem [shape: u32[8], index: 0, kind: output, shape index: {}]  }

// kernel: _lambda_.1
= control target key start
LH: loop header
LB: loop body
LE: loop exit
PB: predicated region body
PF: predicated region fallthrough
CT: control target
= control target key end

     0   :  { %vm258_vm0 = vcmask 1044480   ;;  %vm251_vm1 = vcmask 39936   ;;  %v2707_v0 = vmov 0   ;;  %vm339_vm2 = vcmask 130048   ;;  %s3156_s2 = inlined_call_operand.vmem [shape: f32[408,128], index: 2, kind: input, shape index: {}]   ;;  %s3157_s1 = inlined_call_operand.vmem [shape: f32[16,1], index: 1, kind: input, shape index: {}]   ;;  %s3158_s0 = inlined_call_operand.vmem [shape: f32[16,5], index: 0, kind: input, shape index: {}]   ;;  %s3159_s3 = inlined_call_operand.vmem [shape: f32[16,128], index: 3, kind: output, shape index: {}]  }
   0x1   :  { %2658 = vset.pattern.permute.xlu0 %v2707_v0  ;;  %v18_v1 = vld [vmem:[%s3156_s2] sm:$0x1f]  ;;  %v15_v4 = vld [vmem:[%s3158_s0 + $0x8] sm:$0xff]  ;;  %v337_v6 = vld [vmem:[%s3156_s2 + $0x18] sm:$0xff]  ;;  %v2708_v33 = vmov 2102212464  }
   0x2   :  { %v16_v2 = vld [vmem:[%s3157_s1] sm:$0xff]  ;;  %2364 = vmatprep.subr.msk.mxu0 %vm258_vm0, %v18_v1  ;;  %v17_v5 = vld [vmem:[%s3157_s1 + $0x8] sm:$0xff]  ;;  %v2191_v8 = vld [vmem:[%s3156_s2 + $0x10] ss:$0 sm:$0xff]  ;;  %v2709_v37 = vmov 920167782  }
   0x3   :  { %v14_v3 = vld [vmem:[%s3158_s0] sm:$0xff]  ;;  %23 = vperm.xlu0 %2658, %v16_v2   ;;  %2365 = vmatpush3.msk.msra.mxu0 %vm258_vm0, %v18_v1  ;;  %v2190_v7 = vld [vmem:[%s3156_s2 + $0x8] ss:$0 sm:$0xff]  ;;  %v2710_v39 = vmov 683565275  }
   0x4   :  { %2366 = vmatprep.mubr.msk.f32.mxu0 %vm251_vm1, %v14_v3  ;;  %v2711_v42 = vmov 1326507024   ;;  %v2712_v45 = vmov 2475754826   ;;  %v2713_v50 = vmov 2131351028  }
   0x5   :  { %2367 = vmatmul.mubr.msk.f32.vlgmr.msra.gmra.mrb[0].mxu0 %vm251_vm1, %v15_v4 }
   0x6   :  { %2373 = vmatprep.mubr.msk.f32.mxu0 %vm339_vm2, %v337_v6 }
   0x7   :  { %28 = vperm.xlu0 %2658, %v17_v5  }
  0x82   :  { %v24_v9 = vpop.permute.xlu0 %23 }
  0x83   :  { %v35_v10 = vmul.f32 %v2190_v7, %v24_v9 }
  0x85   :  { %v2759_v11 = vadd.f32 %v2191_v8, %v35_v10 }
  0x86   :  { %v29_v12 = vpop.permute.xlu0 %28 }
  0x87   :  { %v46_v13 = vand.u32 2139095040, %v2759_v11  ;;  %v36_v14 = vmul.f32 %v2190_v7, %v29_v12  ;;  %v43_v15 = vand.u32 2147483647, %v2759_v11 }
  0x89   :  { %v47_v16 = vshrl.u32 %v46_v13, 23  ;;  %v2763_v17 = vadd.f32 %v2191_v8, %v36_v14  ;;  %v50_v21 = vand.u32 8388607, %v43_v15 }
  0x8b   :  { %v2192_v18 = vadd.s32 4294967169, %v47_v16  ;;  %v150_v19 = vand.u32 2139095040, %v2763_v17  ;;  %v147_v20 = vand.u32 2147483647, %v2763_v17  ;;  %v51_v27 = vor.u32 8388608, %v50_v21 }
  0x8c   :  { %vm149_vm1 = vcmp.lt.s32.totalorder %v2763_v17, 0 }
  0x8d   :  { %v53_v22 = vadd.s32 1, %v2192_v18  ;;  %v151_v23 = vshrl.u32 %v150_v19, 23  ;;  %v154_v24 = vand.u32 8388607, %v147_v20  ;;  %v2777_v36 = vshll.u32 %v51_v27, 8 }
  0x8f   :  { %vm54_vm3 = vcmp.gt.s32.totalorder %v53_v22, 0  ;;  %v2196_v25 = vadd.s32 4294967169, %v151_v23  ;;  %v155_v26 = vor.u32 8388608, %v154_v24 }
  0x90   :  { %v55_v28 = vsel %vm54_vm3, %v53_v22, 0  ;;  %vm148_vm3 = vcmp.le.f32.partialorder %v147_v20, 0.7853982 }
  0x91   :  { %v2771_v29 = vshrl.u32 %v55_v28, 5  ;;  %v57_v30 = vand.u32 31, %v55_v28  ;;  %v157_v31 = vadd.s32 1, %v2196_v25  ;;  %v2775_v35 = vshll.u32 %v155_v26, 8 }
  0x93   :  { %v2773_v32 = vsub.s32 32, %v57_v30  ;;  %v69_v34 = vshll.u32 %v2708_v33, %v57_v30  ;;  %v72_v38 = vshll.u32 %v2709_v37, %v57_v30  ;;  %vm78_vm4 = vcmp.lt.s32.totalorder %v2771_v29, 4 }
  0x94   :  { %vm158_vm5 = vcmp.gt.s32.totalorder %v157_v31, 0  ;;  %v60_v40 = vshll.u32 %v2710_v39, %v57_v30  ;;  %v63_v46 = vshll.u32 %v2712_v45, %v57_v30  ;;  %v66_v51 = vshll.u32 %v2713_v50, %v57_v30 }
  0x95   :  { %v70_v41 = vshrl.u32 %v2709_v37, %v2773_v32  ;;  %v73_v43 = vshrl.u32 %v2711_v42, %v2773_v32  ;;  %v159_v44 = vsel %vm158_vm5, %v157_v31, 0  ;;  %v61_v49 = vshrl.u32 %v2712_v45, %v2773_v32 }
  0x96   :  { %v160_v47 = vshrl.u32 %v159_v44, 5  ;;  %v161_v48 = vand.u32 31, %v159_v44  ;;  %v64_v54 = vshrl.u32 %v2713_v50, %v2773_v32  ;;  %v67_v55 = vshrl.u32 %v2708_v33, %v2773_v32 }
  0x97   :  { %v71_v52 = vor.u32 %v70_v41, %v69_v34  ;;  %v74_v53 = vor.u32 %v73_v43, %v72_v38  ;;  %v62_v12 = vor.u32 %v61_v49, %v60_v40  ;;  %v59_v38 = vshrl.u32 %v2710_v39, %v2773_v32 }
  0x98   :  { %v162_v56 = vsub.s32 32, %v161_v48  ;;  %v173_v57 = vshll.u32 %v2708_v33, %v161_v48  ;;  %v176_v58 = vshll.u32 %v2709_v37, %v161_v48  ;;  %vm182_vm6 = vcmp.lt.s32.totalorder %v160_v47, 4 }
  0x99   :  { %v84_v59 = vsel %vm78_vm4, %v71_v52, 920167782  ;;  %v88_v60 = vsel %vm78_vm4, %v74_v53, 1326507024  ;;  %v164_v61 = vshll.u32 %v2710_v39, %v161_v48  ;;  %v167_v62 = vshll.u32 %v2712_v45, %v161_v48 }
  0x9a   :  { %v174_v63 = vshrl.u32 %v2709_v37, %v162_v56  ;;  %v177_v0 = vshrl.u32 %v2711_v42, %v162_v56  ;;  %v163_v1 = vshrl.u32 %v2710_v39, %v162_v56  ;;  %v165_v2 = vshrl.u32 %v2712_v45, %v162_v56 }
  0x9b   :  { %v168_v3 = vshrl.u32 %v2713_v50, %v162_v56  ;;  %v170_v4 = vshll.u32 %v2713_v50, %v161_v48  ;;  %v171_v5 = vshrl.u32 %v2708_v33, %v162_v56  ;;  %vm179_vm7 = vcmp.lt.s32.totalorder %v160_v47, 1 }
  0x9c   :  { %v175_v6 = vor.u32 %v174_v63, %v173_v57  ;;  %v178_v7 = vor.u32 %v177_v0, %v176_v58  ;;  %v166_v8 = vor.u32 %v165_v2, %v164_v61  ;;  %vm180_vm8 = vcmp.lt.s32.totalorder %v160_v47, 2 }
  0x9d   :  { %v169_v9 = vor.u32 %v168_v3, %v167_v62  ;;  %v172_v10 = vor.u32 %v171_v5, %v170_v4  ;;  %vm181_vm9 = vcmp.lt.s32.totalorder %v160_v47, 3  ;;  %v65_v18 = vor.u32 %v64_v54, %v63_v46 }
  0x9e   :  { %v188_v13 = vsel %vm182_vm6, %v175_v6, 920167782  ;;  %v192_v14 = vsel %vm182_vm6, %v178_v7, 1326507024  ;;  %v183_v16 = vsel %vm179_vm7, %v163_v1, %v166_v8  ;;  %v68_v27 = vor.u32 %v67_v55, %v66_v51 }
  0x9f   :  { %v184_v19 = vsel %vm182_vm6, %v172_v10, 2102212464  ;;  %v187_v21 = vsel %vm179_vm7, %v166_v8, %v169_v9  ;;  %v189_v22 = vsel %vm181_vm9, %v172_v10, %v188_v13  ;;  %v191_v23 = vsel %vm179_vm7, %v169_v9, %v172_v10 }
  0xa0   :  { %v185_v24 = vsel %vm181_vm9, %v169_v9, %v184_v19  ;;  %v190_v25 = vsel %vm180_vm8, %v187_v21, %v189_v22  ;;  %v193_v26 = vsel %vm181_vm9, %v175_v6, %v192_v14  ;;  %vm75_vm10 = vcmp.lt.s32.totalorder %v2771_v29, 1 }
  0xa1   :  { %v186_v28 = vsel %vm180_vm8, %v183_v16, %v185_v24  ;;  %v194_v30 = vsel %vm180_vm8, %v191_v23, %v193_v26  ;;  %v2799_v31 = vmul.u32.u64.low %v2775_v35, %v190_v25  ;;  %v2800_v33 = vmul.u32.u64.high %v2775_v35, %v190_v25, %v2799_v31 }
  0xa2   :  { %v2803_v34 = vmul.u32.u64.low %v2775_v35, %v194_v30  ;;  %v2804_v37 = vmul.u32.u64.high %v2775_v35, %v194_v30, %v2803_v34  ;;  %v202_v40 = vmul.u32 %v2775_v35, %v186_v28  ;;  %vm77_vm11 = vcmp.lt.s32.totalorder %v2771_v29, 3 }
  0xa3   :  { %v80_v41 = vsel %vm78_vm4, %v68_v27, 2102212464  ;;  %v83_v42 = vsel %vm75_vm10, %v62_v12, %v65_v18  ;;  %vm76_vm12 = vcmp.lt.s32.totalorder %v2771_v29, 2  ;;  %v85_v43 = vsel %vm77_vm11, %v68_v27, %v84_v59 }
  0xa4   :  { %v87_v44 = vsel %vm75_vm10, %v65_v18, %v68_v27  ;;  %v89_v45 = vsel %vm77_vm11, %v71_v52, %v88_v60  ;;  %v205_v46 = vadd.s32 1, %v2800_v33  ;;  %v79_v47 = vsel %vm75_vm10, %v59_v38, %v62_v12 }
  0xa5   :  { %v86_v48 = vsel %vm76_vm12, %v83_v42, %v85_v43  ;;  %v90_v32 = vsel %vm76_vm12, %v87_v44, %v89_v45  ;;  %vm204_vm13 = vc.u32 %v2804_v37, %v2799_v31  ;;  %v81_v39 = vsel %vm77_vm11, %v65_v18, %v80_v41 }
  0xa6   :  { %v2816_v35 = vmul.u32.u64.low %v2777_v36, %v90_v32  ;;  %v2817_v49 = vmul.u32.u64.high %v2777_v36, %v90_v32, %v2816_v35  ;;  %v206_v50 = vsel %vm204_vm13, %v205_v46, %v2800_v33  ;;  %v82_v52 = vsel %vm76_vm12, %v79_v47, %v81_v39 }
  0xa7   :  { %v2821_v51 = vmul.u32.u64.low %v2777_v36, %v86_v48  ;;  %v2822_v29 = vmul.u32.u64.high %v2777_v36, %v86_v48, %v2821_v51  ;;  %v207_v53 = vadd.s32 %v206_v50, %v202_v40  ;;  %v98_v57 = vmul.u32 %v2777_v36, %v82_v52 }
  0xa8   :  { %v203_v9 = vadd.s32 %v2799_v31, %v2804_v37  ;;  %vm45_vm4 = vcmp.lt.s32.totalorder %v2759_v11, 0  ;;  %vm44_vm5 = vcmp.le.f32.partialorder %v43_v15, 0.7853982  ;;  %vm239_vm9 = vweird.f32 %v2763_v17 }
  0xa9   :  { %v208_v54 = vadd.s32 536870912, %v207_v53  ;;  %vm100_vm14 = vc.u32 %v2817_v49, %v2821_v51  ;;  %v101_v55 = vadd.s32 1, %v2822_v29  ;;  %v99_v24 = vadd.s32 %v2821_v51, %v2817_v49 }
  0xaa   :  { %vm135_vm13 = vweird.f32 %v2759_v11 }
  0xab   :  { %v209_v56 = vshrl.u32 %v208_v54, 30  ;;  %v102_v58 = vsel %vm100_vm14, %v101_v55, %v2822_v29  ;;  %vm436_vm14 = vcmask 1040384  }
  0xac   :  { %v103_v60 = vadd.s32 %v102_v58, %v98_v57 }
  0xad   :  { %v210_v59 = vshll.u32 %v209_v56, 30  ;;  %v233_v37 = vsub.s32 4, %v209_v56 }
  0xae   :  { %v104_v62 = vadd.s32 536870912, %v103_v60 }
  0xaf   :  { %v211_v61 = vsub.s32 %v207_v53, %v210_v59  ;;  %v234_v44 = vsel %vm149_vm1, %v233_v37, %v209_v56 }
  0xb0   :  { %v105_v0 = vshrl.u32 %v104_v62, 30  ;;  %v236_v48 = vsel %vm148_vm3, 0, %v234_v44  ;;  %v1124_v44 = vld [vmem:[%s3156_s2 + $0xa0] sm:$0xff] }
  0xb1   :  { %v213_v63 = vsub.s32 0, %v211_v61  ;;  %v240_v49 = vadd.s32 3, %v236_v48  ;;  %v1127_v48 = vld [vmem:[%s3156_s2 + $0xb8] sm:$0xff] }
  0xb2   :  { %v106_v2 = vshll.u32 %v105_v0, 30  ;;  %v129_v39 = vsub.s32 4, %v105_v0 }
  0xb3   :  { %v2197_v1 = vmin.u32 %v213_v63, %v211_v61  ;;  %v241_v29 = vand.u32 3, %v240_v49  ;;  %v1472_v49 = vld [vmem:[%s3156_s2 + $0xd0] sm:$0xff] }
  0xb4   :  { %v107_v4 = vsub.s32 %v103_v60, %v106_v2  ;;  %v130_v20 = vsel %vm45_vm4, %v129_v39, %v105_v0  ;;  %v1128_v39 = vld [vmem:[%s3156_s2 + $0xc0] sm:$0x1] }
  0xb5   :  { %v215_v3 = vclz %v2197_v1  ;;  %v132_v53 = vsel %vm44_vm5, 0, %v130_v20  ;;  %vm246_vm6 = vcmp.eq.s32.totalorder %v241_v29, 2  ;;  %vm243_vm7 = vcmp.eq.s32.totalorder %v241_v29, 0  ;;  %v1473_v20 = vld [vmem:[%s3156_s2 + $0xd8] sm:$0x1] }
  0xb6   :  { %v109_v6 = vsub.s32 0, %v107_v4  ;;  %v136_v56 = vadd.s32 3, %v132_v53  ;;  %vm242_vm8 = vcmp.lt.s32.totalorder %v241_v29, 2  ;;  %v1475_v29 = vld [vmem:[%s3156_s2 + $0xe8] sm:$0xff] }
  0xb7   :  { %v2198_v5 = vadd.s32 4294967294, %v215_v3 }
  0xb8   :  { %v2193_v8 = vmin.u32 %v109_v6, %v107_v4  ;;  %v137_v62 = vand.u32 3, %v136_v56 }
  0xb9   :  { %vm2199_vm15 = vcmp.lt.s32.totalorder %v2198_v5, 0 }
  0xba   :  { %v218_v7 = vsel %vm2199_vm15, 0, %v2198_v5  ;;  %v111_v12 = vclz %v2193_v8  ;;  %vm142_vm10 = vcmp.eq.s32.totalorder %v137_v62, 2  ;;  %vm139_vm11 = vcmp.eq.s32.totalorder %v137_v62, 0 }
  0xbb   :  { %v219_v36 = vsub.s32 32, %v218_v7  ;;  %v223_v10 = vsub.s32 4294967266, %v218_v7  ;;  %v220_v13 = vshll.u32 %v211_v61, %v218_v7  ;;  %vm138_vm12 = vcmp.lt.s32.totalorder %v137_v62, 2 }
  0xbc   :  { %v2194_v18 = vadd.s32 4294967294, %v111_v12  ;;  %vm429_vm15 = vcmask 138240  }
  0xbd   :  { %v221_v14 = vshrl.u32 %v203_v9, %v219_v36  ;;  %v224_v16 = vadd.s32 127, %v223_v10  ;;  %v424_v9 = vld [vmem:[%s3156_s2 + $0x40] sm:$0xff] }
  0xbe   :  { %vm2195_vm0 = vcmp.lt.s32.totalorder %v2194_v18, 0 }
  0xbf   :  { %v222_v19 = vor.u32 %v221_v14, %v220_v13  ;;  %v225_v21 = vshll.u32 %v224_v16, 23  ;;  %v114_v23 = vsel %vm2195_vm0, 0, %v2194_v18  ;;  %v338_v13 = vld [vmem:[%s3156_s2 + $0x20] sm:$0xff]  ;;  %v426_v14 = vld [vmem:[%s3156_s2 + $0x50] sm:$0xff]  ;;  %v427_v16 = vld [vmem:[%s3156_s2 + $0x58] sm:$0xff] }
  0xc0   :  { %v115_v25 = vsub.s32 32, %v114_v23  ;;  %v119_v26 = vsub.s32 4294967266, %v114_v23  ;;  %v116_v30 = vshll.u32 %v107_v4, %v114_v23  ;;  %v2551_v18 = vpack.c.bf16 %v427_v16, %v426_v14  ;;  %vm2867_vm0 = vmpackc.low %vm429_vm15, %vm429_vm15 }
  0xc1   :  { %v226_v22 = vor.u32 4788187, %v225_v21  ;;  %v229_v28 = vcvt.s32.f32 %v222_v19 }
  0xc2   :  { %v117_v31 = vshrl.u32 %v99_v24, %v115_v25  ;;  %v120_v33 = vadd.s32 127, %v119_v26  ;;  %v428_v24 = vld [vmem:[%s3156_s2 + $0x60] sm:$0x1]  ;;  %v696_v25 = vld [vmem:[%s3156_s2 + $0x68] sm:$0xff]  ;;  %v697_v26 = vld [vmem:[%s3156_s2 + $0x70] sm:$0xff] }
  0xc3   :  { %v227_v27 = vand.u32 2147483647, %v226_v22 }
  0xc4   :  { %v118_v38 = vor.u32 %v117_v31, %v116_v30  ;;  %v121_v40 = vshll.u32 %v120_v33, 23  ;;  %v698_v31 = vld [vmem:[%s3156_s2 + $0x78] sm:$0x1]  ;;  %v699_v33 = vld [vmem:[%s3156_s2 + $0x80] sm:$0xff] }
  0xc5   :  { %v230_v34 = vmul.f32 %v229_v28, %v227_v27  ;;  %v2555_v27 = vpack.c.bf16 %v697_v26, %v696_v25 }
  0xc6   :  { %v122_v42 = vor.u32 4788187, %v121_v40  ;;  %v125_v47 = vcvt.s32.f32 %v118_v38 }
  0xc7   :  { %v231_v41 = vxor.u32 2147483648, %v230_v34 }
  0xc8   :  { %v123_v46 = vand.u32 2147483647, %v122_v42  ;;  %v701_v42 = vld [vmem:[%s3156_s2 + $0x90] sm:$0x1] }
  0xc9   :  { %v232_v43 = vsel %vm149_vm1, %v231_v41, %v230_v34  ;;  %v700_v34 = vld [vmem:[%s3156_s2 + $0x88] sm:$0xff]  ;;  %vm1972_vm1 = vcmask 523264  }
  0xca   :  { %v235_v45 = vsel %vm148_vm3, %v2763_v17, %v232_v43  ;;  %v126_v32 = vmul.f32 %v125_v47, %v123_v46  ;;  %v423_v17 = vld [vmem:[%s3156_s2 + $0x38] sm:$0xff]  ;;  %v2565_v37 = vpack.c.bf16 %v700_v34, %v699_v33  ;;  %v1125_v46 = vld [vmem:[%s3156_s2 + $0xa8] sm:$0x1]  ;;  %v1126_v47 = vld [vmem:[%s3156_s2 + $0xb0] sm:$0xff] }
  0xcb   :  { %2659 = vcosq.f32 %v235_v45  ;;  %v2541_v12 = vpack.c.bf16 %v424_v9, %v423_v17  ;;  %v1123_v43 = vld [vmem:[%s3156_s2 + $0x98] sm:$0xff] }
  0xcc   :  { %2661 = vsinq.f32 %v235_v45  ;;  %v127_v35 = vxor.u32 2147483648, %v126_v32  ;;  %v2577_v45 = vpack.c.bf16 %v1124_v44, %v1123_v43 }
  0xce   :  { %v128_v50 = vsel %vm45_vm4, %v127_v35, %v126_v32  ;;  %v2587_v32 = vpack.c.bf16 %v1127_v48, %v1126_v47  ;;  %v1471_v35 = vld [vmem:[%s3156_s2 + $0xc8] sm:$0xff] }
  0xcf   :  { %v131_v51 = vsel %vm44_vm5, %v2759_v11, %v128_v50  ;;  %v425_v11 = vld [vmem:[%s3156_s2 + $0x48] sm:$0x1]  ;;  %v2595_v50 = vpack.c.bf16 %v1472_v49, %v1471_v35 }
  0xd0   :  { %2663 = vcosq.f32 %v131_v51 }
  0xd1   :  { %2665 = vsinq.f32 %v131_v51  ;;  %v1474_v51 = vld [vmem:[%s3156_s2 + $0xe0] sm:$0xff] }
  0xd2   :  { %v2605_v53 = vpack.c.bf16 %v1475_v29, %v1474_v51 }
  0xd5   :  { %v2660_v52 = vpop.eup %2659 }
  0xd6   :  { %v2662_v54 = vpop.eup %2661  ;;  %v247_v55 = vxor.u32 2147483648, %v2660_v52 }
  0xd7   :  { %v244_v57 = vxor.u32 2147483648, %v2662_v54 }
  0xd8   :  { %v2368_v58 = vpop.f32.mrb[0].mxu0  ;;  %v248_v59 = vsel %vm246_vm6, %v247_v55, %v2662_v54  ;;  %v2997_v54 = vld [vmem:[%s3156_s2 + $0x28] sm:$0xff] }
  0xd9   :  { %v328_v60 = vpop.f32.mrb[1].mxu0  ;;  %v245_v15 = vsel %vm243_vm7, %v2660_v52, %v244_v57  ;;  %v1476_v52 = vld [vmem:[%s3156_s2 + $0xf0] sm:$0x1] }
  0xda   :  { %v249_v61 = vsel %vm242_vm8, %v245_v15, %v248_v59  ;;  %v2664_v0 = vpop.eup %2663 }
  0xdb   :  { %v250_v63 = vsel %vm239_vm9, nan, %v249_v61  ;;  %v2666_v2 = vpop.eup %2665  ;;  %v143_v3 = vxor.u32 2147483648, %v2664_v0 }
  0xdc   :  { %v334_v1 = vadd.f32 %v2368_v58, %v250_v63  ;;  %v140_v4 = vxor.u32 2147483648, %v2666_v2 }
  0xdd   :  { %v144_v5 = vsel %vm142_vm10, %v143_v3, %v2666_v2 }
  0xde   :  { %v141_v6 = vsel %vm139_vm11, %v2664_v0, %v140_v4 }
  0xdf   :  { %v145_v7 = vsel %vm138_vm12, %v141_v6, %v144_v5 }
  0xe0   :  { %v146_v8 = vsel %vm135_vm13, nan, %v145_v7 }
  0xe1   :  { %v329_v36 = vadd.f32 %v328_v60, %v146_v8 }
  0xe3   :  { %v2537_v10 = vpack.c.bf16 %v334_v1, %v329_v36 }
  0xe5   :  { %2538 = vmatprep.subr.bf16.mxu0 %v2537_v10 }
  0xe6   :  { %2540 = vmatpush3.bf16.msra.mxu0 %v2537_v10  ;;  %v3020_v10 = vld [vmem:[%s3156_s2 + $0x30] sm:$0xff] }
  0xe7   :  { %2542 = vmatprep.subr.bf16.mxu0 %v2541_v12 }
  0xe9   :  { %2374 = vmatmul.mubr.msk.f32.vlgmr.msra.gmra.mrb[2].mxu0 %vm339_vm2, %v338_v13 }
  0xea   :  { %2544 = vmatpush3.bf16.msra.mxu0 %v2541_v12 }
  0xeb   :  { %2380 = vmatprep.subr.msk.mxu0 %vm436_vm14, %v425_v11 }
  0xee   :  { %2381 = vmatpush3.msk.msra.mxu0 %vm436_vm14, %v425_v11 }
  0xef   :  { %2552 = vmatprep.subr.bf16.mxu0 %v2551_v18 }
 0x1bc   :  { %v2861_v19 = vpop.f32.mrb[2].mxu0 }
 0x1bd   :  { %v2863_v21 = vpop.f32.mrb[3].mxu0 }
 0x1be   :  { %v2873_v23 = vpack.c.bf16 %v2861_v19, %v2863_v21  ;;  %2382 = vmatprep.mubr.msk.f32.mxu0 %vm429_vm15, %v2863_v21 }
 0x1bf   :  { %2383 = vmatmul.mubr.msk.f32.vlgmr.msra.gmra.mrb[4].mxu0 %vm429_vm15, %v2861_v19 }
 0x1c0   :  { %2554 = vmatpush3.bf16.msra.mxu0 %v2551_v18  ;;  %2547 = vmatprep.subr.msk.bf16.mxu1 %vm2867_vm0, %v2873_v23 }
 0x1c1   :  { %2398 = vmatprep.mubr.msk.f32.mxu0 %vm429_vm15, %v2863_v21  ;;  %2550 = vmatpush3.bf16.xpose.msk.msra.mxu1 %vm2867_vm0, %v2873_v23 }
 0x1c2   :  { %2396 = vmatprep.subr.msk.mxu0 %vm436_vm14, %v428_v24  ;;  %2556 = vmatprep.subr.bf16.mxu1 %v2555_v27 }
 0x1c4   :  { %2397 = vmatpush3.msk.msra.mxu0 %vm436_vm14, %v428_v24 }
 0x1c5   :  { %2399 = vmatmul.mubr.msk.f32.vlgmr.msra.gmra.mrb[6].mxu0 %vm429_vm15, %v2861_v19  ;;  %2561 = vmatprep.subr.msk.bf16.mxu0 %vm2867_vm0, %v2873_v23 }
 0x1cb   :  { %2564 = vmatpush3.bf16.xpose.msk.msra.mxu0 %vm2867_vm0, %v2873_v23 }
 0x292   :  { %v2384_v28 = vpop.f32.mrb[4].mxu0 }
 0x293   :  { %v506_v30 = vpop.f32.mrb[5].mxu0 }
 0x294   :  { %2389 = vmatprep.mubr.msk.f32.mxu1 %vm429_vm15, %v506_v30 }
 0x295   :  { %2390 = vmatmul.mubr.msk.f32.vlgmr.msra.gmra.mrb[0].mxu1 %vm429_vm15, %v2384_v28 }
 0x296   :  { %2558 = vmatpush3.bf16.msra.mxu1 %v2555_v27  ;;  %2407 = vmatprep.mubr.msk.f32.mxu1 %vm429_vm15, %v2863_v21 }
 0x297   :  { %2405 = vmatprep.subr.msk.mxu1 %vm436_vm14, %v698_v31 }
 0x298   :  { %v2400_v38 = vpop.f32.mrb[6].mxu0 }
 0x299   :  { %v687_v40 = vpop.f32.mrb[7].mxu0 }
 0x29a   :  { %v2920_v41 = vpack.c.bf16 %v2400_v38, %v687_v40  ;;  %2406 = vmatpush3.msk.msra.mxu1 %vm436_vm14, %v698_v31 }
 0x29b   :  { %2408 = vmatmul.mubr.msk.f32.vlgmr.msra.gmra.mrb[2].mxu1 %vm429_vm15, %v2861_v19  ;;  %2566 = vmatprep.subr.bf16.mxu1 %v2565_v37 }
 0x29c   :  { %2568 = vmatpush3.bf16.msra.mxu1 %v2565_v37  ;;  %2423 = vmatprep.mubr.msk.f32.mxu1 %vm429_vm15, %v2863_v21 }
 0x29d   :  { %2421 = vmatprep.subr.msk.mxu1 %vm436_vm14, %v701_v42 }
 0x2a0   :  { %2422 = vmatpush3.msk.msra.mxu1 %vm436_vm14, %v701_v42 }
 0x2a1   :  { %2424 = vmatmul.mubr.msk.f32.vlgmr.msra.gmra.mrb[4].mxu1 %vm429_vm15, %v2861_v19  ;;  %2578 = vmatprep.subr.bf16.mxu1 %v2577_v45 }
 0x2a2   :  { %2580 = vmatpush3.bf16.msra.mxu1 %v2577_v45  ;;  %2446 = vmatprep.mubr.msk.f32.mxu1 %vm429_vm15, %v2863_v21 }
 0x2a3   :  { %2444 = vmatprep.subr.msk.mxu1 %vm436_vm14, %v1125_v46 }
 0x2a6   :  { %2445 = vmatpush3.msk.msra.mxu1 %vm436_vm14, %v1125_v46 }
 0x2a7   :  { %2447 = vmatmul.mubr.msk.f32.vlgmr.msra.gmra.mrb[6].mxu1 %vm429_vm15, %v2861_v19  ;;  %2588 = vmatprep.subr.bf16.mxu1 %v2587_v32 }
 0x2a8   :  { %2590 = vmatpush3.bf16.msra.mxu1 %v2587_v32  ;;  %2462 = vmatprep.mubr.msk.f32.mxu1 %vm429_vm15, %v2863_v21 }
 0x2a9   :  { %2460 = vmatprep.subr.msk.mxu1 %vm436_vm14, %v1128_v39 }
 0x2ac   :  { %2461 = vmatpush3.msk.msra.mxu1 %vm436_vm14, %v1128_v39 }
 0x2ad   :  { %2463 = vmatmul.mubr.msk.f32.vlgmr.msra.gmra.mrb[8].mxu1 %vm429_vm15, %v2861_v19  ;;  %2596 = vmatprep.subr.bf16.mxu1 %v2595_v50 }
 0x2ae   :  { %2598 = vmatpush3.bf16.msra.mxu1 %v2595_v50  ;;  %2478 = vmatprep.mubr.msk.f32.mxu1 %vm429_vm15, %v2863_v21 }
 0x2af   :  { %2476 = vmatprep.subr.msk.mxu1 %vm436_vm14, %v1473_v20 }
 0x2b2   :  { %2477 = vmatpush3.msk.msra.mxu1 %vm436_vm14, %v1473_v20 }
 0x2b3   :  { %2479 = vmatmul.mubr.msk.f32.vlgmr.msra.gmra.mrb[10].mxu1 %vm429_vm15, %v2861_v19  ;;  %2606 = vmatprep.subr.bf16.mxu1 %v2605_v53 }
 0x2b4   :  { %2608 = vmatpush3.bf16.msra.mxu1 %v2605_v53  ;;  %2494 = vmatprep.mubr.msk.f32.mxu1 %vm429_vm15, %v2863_v21 }
 0x2b5   :  { %2492 = vmatprep.subr.msk.mxu1 %vm436_vm14, %v1476_v52 }
 0x2b8   :  { %2493 = vmatpush3.msk.msra.mxu1 %vm436_vm14, %v1476_v52 }
 0x2b9   :  { %2495 = vmatmul.mubr.msk.f32.vlgmr.msra.gmra.mrb[12].mxu1 %vm429_vm15, %v2861_v19 }
 0x368   :  { %v2391_v55 = vpop.f32.mrb[0].mxu1 }
 0x369   :  { %v587_v56 = vpop.f32.mrb[1].mxu1  ;;  %v593_v11 = vadd.f32 %v2391_v55, %v3020_v10 }
 0x36a   :  { %v588_v57 = vadd.f32 %v587_v56, %v2997_v54 }
 0x36b   :  { %v599_v16 = vsel %vm339_vm2, %v593_v11, -inf }
 0x36c   :  { %v596_v58 = vsel %vm339_vm2, %v588_v57, -inf }
 0x36d   :  { %597 = vmax.xlane.f32.xlu0 %v596_v58 }
 0x36e   :  { %v2409_v59 = vpop.f32.mrb[2].mxu1 }
 0x36f   :  { %v771_v60 = vpop.f32.mrb[3].mxu1 }
 0x370   :  { %2414 = vmatprep.mubr.msk.f32.mxu0 %vm429_vm15, %v771_v60 }
 0x371   :  { %2415 = vmatmul.mubr.msk.f32.vlgmr.msra.gmra.mrb[8].mxu0 %vm429_vm15, %v2409_v59 }
 0x374   :  { %v2425_v15 = vpop.f32.mrb[4].mxu1 }
 0x375   :  { %v952_v61 = vpop.f32.mrb[5].mxu1 }
 0x376   :  { %v2569_v62 = vpack.c.bf16 %v2425_v15, %v952_v61 }
 0x378   :  { %2570 = vmatprep.subr.bf16.mxu0 %v2569_v62 }
 0x379   :  { %2572 = vmatpush3.bf16.msra.mxu0 %v2569_v62 }
 0x37a   :  { %2574 = vmatprep.subr.bf16.mxu0 %v2920_v41  ;;  %v3004_v63 = vpop.f32.mrb[6].mxu1 }
 0x37b   :  { %v3006_v0 = vpop.f32.mrb[7].mxu1 }
 0x380   :  { %v2464_v1 = vpop.f32.mrb[8].mxu1 }
 0x381   :  { %v1379_v2 = vpop.f32.mrb[9].mxu1 }
 0x382   :  { %v3008_v3 = vpack.c.bf16 %v2464_v1, %v1379_v2 }
 0x386   :  { %v3010_v4 = vpop.f32.mrb[10].mxu1 }
 0x387   :  { %v3012_v5 = vpop.f32.mrb[11].mxu1 }
 0x38c   :  { %v2496_v6 = vpop.f32.mrb[12].mxu1 }
 0x38d   :  { %v1727_v7 = vpop.f32.mrb[13].mxu1 }
 0x38e   :  { %v3014_v8 = vpack.c.bf16 %v2496_v6, %v1727_v7 }
 0x3fa   :  { %v598_v18 = vpop.xlane.xlu0 %597 }
 0x3fb   :  { %v602_v26 = vsub.f32 %v588_v57, %v598_v18 }
 0x3fd   :  { %v604_v31 = vmul.f32 1.442695, %v602_v26 }
 0x444   :  { %v2416_v17 = vpop.f32.mrb[8].mxu0 }
 0x445   :  { %v852_v9 = vpop.f32.mrb[9].mxu0  ;;  %v858_v12 = vadd.f32 %v2416_v17, %v3020_v10 }
 0x446   :  { %v853_v36 = vadd.f32 %v852_v9, %v2997_v54 }
 0x447   :  { %v864_v14 = vsel %vm339_vm2, %v858_v12, -inf }
 0x448   :  { %v861_v13 = vsel %vm339_vm2, %v853_v36, -inf }
 0x449   :  { %862 = vmax.xlane.f32.xlu1 %v861_v13 }
 0x44d   :  { %865 = vmax.xlane.f32.xlu1 %v864_v14 }
 0x451   :  { %600 = vmax.xlane.f32.xlu1 %v599_v16 }
 0x4d6   :  { %v863_v24 = vpop.xlane.xlu1 %862 }
 0x4d7   :  { %v867_v25 = vsub.f32 %v853_v36, %v863_v24 }
 0x4d9   :  { %v869_v27 = vmul.f32 1.442695, %v867_v25 }
 0x4da   :  { %v866_v28 = vpop.xlane.xlu1 %865 }
 0x4db   :  { %2667 = vpow2.f32 %v869_v27  ;;  %v868_v30 = vsub.f32 %v858_v12, %v866_v28 }
 0x4dd   :  { %v871_v33 = vmul.f32 1.442695, %v868_v30 }
 0x4de   :  { %v601_v34 = vpop.xlane.xlu1 %600 }
 0x4df   :  { %2669 = vpow2.f32 %v871_v33  ;;  %v603_v37 = vsub.f32 %v593_v11, %v601_v34 }
 0x4e0   :  { %2671 = vpow2.f32 %v604_v31 }
 0x4e1   :  { %v606_v38 = vmul.f32 1.442695, %v603_v37 }
 0x4e3   :  { %2673 = vpow2.f32 %v606_v38 }
 0x4e5   :  { %v2668_v40 = vpop.eup %2667 }
 0x4e6   :  { %v873_v42 = vsel %vm339_vm2, %v2668_v40, 0.0 }
 0x4e7   :  { %874 = vadd.xlane.f32.xlu1 %v873_v42 }
 0x4e9   :  { %v2670_v43 = vpop.eup %2669 }
 0x4ea   :  { %v876_v44 = vsel %vm339_vm2, %v2670_v43, 0.0  ;;  %v2672_v45 = vpop.eup %2671 }
 0x4eb   :  { %877 = vadd.xlane.f32.xlu1 %v876_v44  ;;  %v608_v46 = vsel %vm339_vm2, %v2672_v45, 0.0 }
 0x4ed   :  { %v2674_v47 = vpop.eup %2673 }
 0x4ee   :  { %v611_v48 = vsel %vm339_vm2, %v2674_v47, 0.0 }
 0x4ef   :  { %609 = vadd.xlane.f32.xlu1 %v608_v46 }
 0x4f3   :  { %612 = vadd.xlane.f32.xlu1 %v611_v48 }
 0x574   :  { %v875_v32 = vpop.xlane.xlu1 %874 }
 0x575   :  { %2675 = vrcp.f32 %v875_v32 }
 0x578   :  { %v878_v39 = vpop.xlane.xlu1 %877 }
 0x579   :  { %2677 = vrcp.f32 %v878_v39 }
 0x57c   :  { %v610_v35 = vpop.xlane.xlu1 %609 }
 0x57d   :  { %2679 = vrcp.f32 %v610_v35 }
 0x57f   :  { %v2676_v49 = vpop.eup %2675 }
 0x580   :  { %v613_v50 = vpop.xlane.xlu1 %612  ;;  %v880_v20 = vmul.f32 %v2676_v49, %v2668_v40 }
 0x581   :  { %2681 = vrcp.f32 %v613_v50 }
 0x582   :  { %2430 = vmatprep.mubr.msk.f32.mxu0 %vm339_vm2, %v880_v20 }
 0x583   :  { %v2678_v51 = vpop.eup %2677 }
 0x584   :  { %v882_v29 = vmul.f32 %v2678_v51, %v2670_v43  ;;  %v2253_v43 = vld [vmem:[%s3156_s2 + $0xf8] ss:$0 sm:$0xff] }
 0x586   :  { %2431 = vmatmul.mubr.msk.f32.vlgmr.msra.gmra.mrb[10].mxu0 %vm339_vm2, %v882_v29 }
 0x587   :  { %v2680_v53 = vpop.eup %2679  ;;  %2576 = vmatpush3.bf16.msra.mxu0 %v2920_v41 }
 0x588   :  { %2583 = vmatprep.subr.msk.bf16.mxu0 %vm2867_vm0, %v2873_v23  ;;  %v615_v52 = vmul.f32 %v2680_v53, %v2672_v45 }
 0x58a   :  { %2437 = vmatprep.mubr.msk.f32.mxu0 %vm339_vm2, %v615_v52 }
 0x58b   :  { %v2682_v55 = vpop.eup %2681 }
 0x58c   :  { %v617_v56 = vmul.f32 %v2682_v55, %v2674_v47 }
 0x58e   :  { %2438 = vmatmul.mubr.msk.f32.vlgmr.msra.gmra.mrb[10].mxu0 %vm339_vm2, %v617_v56 }
 0x58f   :  { %2453 = vmatprep.mubr.msk.f32.mxu0 %vm429_vm15, %v3006_v0 }
 0x590   :  { %2586 = vmatpush3.bf16.xpose.msk.msra.mxu0 %vm2867_vm0, %v2873_v23 }
 0x591   :  { %2592 = vmatprep.subr.bf16.mxu0 %v3008_v3 }
 0x597   :  { %2454 = vmatmul.mubr.msk.f32.vlgmr.msra.gmra.mrb[12].mxu0 %vm429_vm15, %v3004_v63 }
 0x598   :  { %2594 = vmatpush3.bf16.msra.mxu0 %v3008_v3 }
 0x599   :  { %2601 = vmatprep.subr.msk.bf16.mxu0 %vm2867_vm0, %v2873_v23 }
 0x66a   :  { %v2455_v41 = vpop.f32.mrb[12].mxu0 }
 0x66b   :  { %v1279_v57 = vpop.f32.mrb[13].mxu0  ;;  %v1285_v59 = vadd.f32 %v2455_v41, %v3020_v10  ;;  %v1870_v41 = vld [vmem:[%s3156_s2 + $0x118] sm:$0xff] }
 0x66c   :  { %v1280_v58 = vadd.f32 %v1279_v57, %v2997_v54 }
 0x66d   :  { %v1291_v15 = vsel %vm339_vm2, %v1285_v59, -inf }
 0x66e   :  { %v1288_v60 = vsel %vm339_vm2, %v1280_v58, -inf }
 0x66f   :  { %1289 = vmax.xlane.f32.xlu1 %v1288_v60 }
 0x673   :  { %1292 = vmax.xlane.f32.xlu1 %v1291_v15 }
 0x6fc   :  { %v1290_v61 = vpop.xlane.xlu1 %1289 }
 0x6fd   :  { %v1294_v62 = vsub.f32 %v1280_v58, %v1290_v61  ;;  %v1872_v58 = vld [vmem:[%s3156_s2 + $0x128] sm:$0xff] }
 0x6ff   :  { %v1296_v63 = vmul.f32 1.442695, %v1294_v62 }
 0x700   :  { %v1293_v0 = vpop.xlane.xlu1 %1292 }
 0x701   :  { %2683 = vpow2.f32 %v1296_v63  ;;  %v1295_v1 = vsub.f32 %v1285_v59, %v1293_v0  ;;  %v1873_v59 = vld [vmem:[%s3156_s2 + $0x130] sm:$0xff] }
 0x702   :  { %v2617_v60 = vpack.c.bf16 %v1873_v59, %v1872_v58  ;;  %v2262_v58 = vld [vmem:[%s3156_s2 + $0x170] ss:$0 sm:$0xff] }
 0x703   :  { %v1298_v2 = vmul.f32 1.442695, %v1295_v1 }
 0x705   :  { %2685 = vpow2.f32 %v1298_v2 }
 0x70b   :  { %v2684_v3 = vpop.eup %2683 }
 0x70c   :  { %v1300_v6 = vsel %vm339_vm2, %v2684_v3, 0.0 }
 0x70d   :  { %1301 = vadd.xlane.f32.xlu1 %v1300_v6 }
 0x70f   :  { %v2686_v7 = vpop.eup %2685 }
 0x710   :  { %v1303_v17 = vsel %vm339_vm2, %v2686_v7, 0.0 }
 0x711   :  { %1304 = vadd.xlane.f32.xlu0 %v1303_v17 }
 0x79a   :  { %v1302_v9 = vpop.xlane.xlu1 %1301 }
 0x79b   :  { %2687 = vrcp.f32 %v1302_v9  ;;  %v2255_v9 = vld [vmem:[%s3156_s2 + $0x108] ss:$0 sm:$0xff] }
 0x79e   :  { %v1305_v36 = vpop.xlane.xlu0 %1304 }
 0x79f   :  { %2689 = vrcp.f32 %v1305_v36 }
 0x7a5   :  { %v2688_v12 = vpop.eup %2687 }
 0x7a6   :  { %v1307_v13 = vmul.f32 %v2688_v12, %v2684_v3  ;;  %v2254_v3 = vld [vmem:[%s3156_s2 + $0x100] ss:$0 sm:$0xff] }
 0x7a8   :  { %2469 = vmatprep.mubr.msk.f32.mxu0 %vm339_vm2, %v1307_v13  ;;  %v1874_v13 = vld [vmem:[%s3156_s2 + $0x138] sm:$0xff] }
 0x7a9   :  { %v2690_v11 = vpop.eup %2689 }
 0x7aa   :  { %v1309_v14 = vmul.f32 %v2690_v11, %v2686_v7  ;;  %v1875_v11 = vld [vmem:[%s3156_s2 + $0x140] sm:$0xff] }
 0x7ac   :  { %2470 = vmatmul.mubr.msk.f32.vlgmr.msra.gmra.mrb[10].mxu0 %vm339_vm2, %v1309_v14 }
 0x7ad   :  { %2604 = vmatpush3.bf16.xpose.msk.msra.mxu0 %vm2867_vm0, %v2873_v23  ;;  %2485 = vmatprep.mubr.msk.f32.mxu0 %vm429_vm15, %v3012_v5 }
 0x7ae   :  { %2610 = vmatprep.subr.bf16.mxu0 %v3014_v8 }
 0x7b4   :  { %2486 = vmatmul.mubr.msk.f32.vlgmr.msra.gmra.mrb[14].mxu0 %vm429_vm15, %v3010_v4 }
 0x7b5   :  { %2612 = vmatpush3.bf16.msra.mxu0 %v3014_v8 }
 0x887   :  { %v2487_v16 = vpop.f32.mrb[14].mxu0 }
 0x888   :  { %v1633_v18 = vadd.f32 %v2487_v16, %v3020_v10  ;;  %v1627_v24 = vpop.f32.mrb[15].mxu0 }
 0x889   :  { %v1628_v25 = vadd.f32 %v1627_v24, %v2997_v54  ;;  %v1876_v24 = vld [vmem:[%s3156_s2 + $0x148] sm:$0xff] }
 0x88a   :  { %v1639_v26 = vsel %vm339_vm2, %v1633_v18, -inf }
 0x88b   :  { %1640 = vmax.xlane.f32.xlu0 %v1639_v26  ;;  %v1636_v22 = vsel %vm339_vm2, %v1628_v25, -inf }
 0x88c   :  { %1637 = vmax.xlane.f32.xlu1 %v1636_v22  ;;  %v1878_v22 = vld [vmem:[%s3156_s2 + $0x158] sm:$0xff] }
 0x918   :  { %v1641_v23 = vpop.xlane.xlu0 %1640 }
 0x919   :  { %v1643_v5 = vsub.f32 %v1633_v18, %v1641_v23  ;;  %v1638_v27 = vpop.xlane.xlu1 %1637  ;;  %v2621_v18 = vpack.c.bf16 %v1875_v11, %v1874_v13  ;;  %v1879_v23 = vld [vmem:[%s3156_s2 + $0x160] sm:$0xff] }
 0x91a   :  { %v1642_v28 = vsub.f32 %v1628_v25, %v1638_v27  ;;  %v1877_v25 = vld [vmem:[%s3156_s2 + $0x150] sm:$0xff]  ;;  %v2256_v27 = vld [vmem:[%s3156_s2 + $0x120] ss:$0 sm:$0xff] }
 0x91b   :  { %v1646_v30 = vmul.f32 1.442695, %v1643_v5  ;;  %v2625_v26 = vpack.c.bf16 %v1877_v25, %v1876_v24  ;;  %v2629_v5 = vpack.c.bf16 %v1879_v23, %v1878_v22 }
 0x91c   :  { %v1644_v4 = vmul.f32 1.442695, %v1642_v28 }
 0x91d   :  { %2691 = vpow2.f32 %v1646_v30 }
 0x91e   :  { %2693 = vpow2.f32 %v1644_v4 }
 0x927   :  { %v2692_v8 = vpop.eup %2691 }
 0x928   :  { %v2694_v31 = vpop.eup %2693  ;;  %v1651_v10 = vsel %vm339_vm2, %v2692_v8, 0.0 }
 0x929   :  { %1652 = vadd.xlane.f32.xlu0 %v1651_v10  ;;  %v1648_v54 = vsel %vm339_vm2, %v2694_v31, 0.0 }
 0x92a   :  { %1649 = vadd.xlane.f32.xlu1 %v1648_v54  ;;  %v2259_v54 = vld [vmem:[%s3156_s2 + $0x168] ss:$0 sm:$0xff] }
 0x9b6   :  { %v1653_v33 = vpop.xlane.xlu0 %1652 }
 0x9b7   :  { %2695 = vrcp.f32 %v1653_v33  ;;  %v1650_v34 = vpop.xlane.xlu1 %1649 }
 0x9b8   :  { %2697 = vrcp.f32 %v1650_v34 }
 0x9c1   :  { %v2696_v37 = vpop.eup %2695 }
 0x9c2   :  { %v2698_v38 = vpop.eup %2697  ;;  %v1657_v42 = vmul.f32 %v2696_v37, %v2692_v8 }
 0x9c3   :  { %v1655_v40 = vmul.f32 %v2698_v38, %v2694_v31 }
 0x9c5   :  { %2501 = vmatprep.mubr.msk.f32.mxu0 %vm339_vm2, %v1655_v40 }
 0x9c6   :  { %2502 = vmatmul.mubr.msk.f32.vlgmr.msra.gmra.mrb[10].mxu0 %vm339_vm2, %v1657_v42 }
 0xa99   :  { %v2503_v44 = vpop.f32.mrb[10].mxu0 }
 0xa9a   :  { %v1825_v45 = vadd.f32 %v2503_v44, %v2253_v43  ;;  %v1808_v46 = vpop.f32.mrb[11].mxu0 }
 0xa9b   :  { %v1824_v47 = vadd.f32 %v2253_v43, %v1808_v46 }
 0xa9c   :  { %v1827_v48 = vadd.f32 %v2861_v19, %v1825_v45 }
 0xa9d   :  { %v1826_v32 = vadd.f32 %v1824_v47, %v2863_v21  ;;  %v1869_v21 = vld [vmem:[%s3156_s2 + $0x110] sm:$0xff] }
 0xa9e   :  { %v1833_v39 = vsel %vm339_vm2, %v1827_v48, 0.0  ;;  %v2613_v57 = vpack.c.bf16 %v1870_v41, %v1869_v21 }
 0xa9f   :  { %1834 = vadd.xlane.f32.xlu0 %v1833_v39  ;;  %v1830_v35 = vsel %vm339_vm2, %v1826_v32, 0.0 }
 0xaa0   :  { %1831 = vadd.xlane.f32.xlu1 %v1830_v35  ;;  %2614 = vmatprep.subr.bf16.mxu1 %v2613_v57 }
 0xaa1   :  { %2616 = vmatpush3.bf16.msra.mxu1 %v2613_v57 }
 0xaa2   :  { %2618 = vmatprep.subr.bf16.mxu1 %v2617_v60 }
 0xb2c   :  { %v1835_v49 = vpop.xlane.xlu0 %1834 }
 0xb2d   :  { %v1838_v50 = vmul.f32 0.0625, %v1835_v49  ;;  %v1832_v20 = vpop.xlane.xlu1 %1831 }
 0xb2e   :  { %v1837_v51 = vmul.f32 0.0625, %v1832_v20 }
 0xb2f   :  { %v1840_v29 = vsub.f32 %v1827_v48, %v1838_v50 }
 0xb30   :  { %v1839_v53 = vsub.f32 %v1826_v32, %v1837_v51  ;;  %v2096_v51 = vld [vmem:[%s3156_s2 + $0x180] sm:$0xff] }
 0xb31   :  { %v1842_v52 = vmul.f32 %v1840_v29, %v1840_v29 }
 0xb32   :  { %v1841_v55 = vmul.f32 %v1839_v53, %v1839_v53 }
 0xb33   :  { %v1846_v56 = vsel %vm339_vm2, %v1842_v52, 0.0 }
 0xb34   :  { %1847 = vadd.xlane.f32.xlu0 %v1846_v56  ;;  %v1843_v19 = vsel %vm339_vm2, %v1841_v55, 0.0 }
 0xb35   :  { %1844 = vadd.xlane.f32.xlu1 %v1843_v19 }
 0xbc1   :  { %v1848_v15 = vpop.xlane.xlu0 %1847 }
 0xbc2   :  { %v1850_v61 = vmul.f32 0.0625, %v1848_v15  ;;  %v1845_v62 = vpop.xlane.xlu1 %1844 }
 0xbc3   :  { %v1849_v63 = vmul.f32 0.0625, %v1845_v62 }
 0xbc4   :  { %v1852_v0 = vadd.f32 1e-06, %v1850_v61  ;;  %v2263_v61 = vld [vmem:[%s3156_s2 + $0x178] ss:$0 sm:$0xff] }
 0xbc5   :  { %v1851_v1 = vadd.f32 1e-06, %v1849_v63 }
 0xbc6   :  { %2699 = vrsqrt.f32 %v1852_v0 }
 0xbc7   :  { %2701 = vrsqrt.f32 %v1851_v1 }
 0xbd0   :  { %v2700_v2 = vpop.eup %2699 }
 0xbd1   :  { %v2702_v6 = vpop.eup %2701  ;;  %v1856_v7 = vmul.f32 %v2700_v2, %v1840_v29  ;;  %v2097_v29 = vld [vmem:[%s3156_s2 + $0x188] sm:$0xff]  ;;  %v2264_v2 = vld [vmem:[%s3156_s2 + $0x190] ss:$0 sm:$0xff] }
 0xbd2   :  { %v1855_v17 = vmul.f32 %v2702_v6, %v1839_v53  ;;  %v2633_v53 = vpack.c.bf16 %v2097_v29, %v2096_v51 }
 0xbd3   :  { %v1862_v36 = vmul.f32 %v2254_v3, %v1856_v7 }
 0xbd4   :  { %v1861_v12 = vmul.f32 %v2254_v3, %v1855_v17  ;;  %2634 = vmatprep.subr.bf16.mxu0 %v2633_v53 }
 0xbd5   :  { %v1868_v16 = vadd.f32 %v2255_v9, %v1862_v36  ;;  %2636 = vmatpush3.bf16.msra.mxu0 %v2633_v53 }
 0xbd6   :  { %v1867_v14 = vadd.f32 %v2255_v9, %v1861_v12 }
 0xbd8   :  { %2508 = vmatprep.mubr.msk.f32.mxu1 %vm339_vm2, %v1867_v14 }
 0xbd9   :  { %2509 = vmatmul.mubr.msk.f32.vlgmr.msra.gmra.mrb[14].mxu1 %vm339_vm2, %v1868_v16 }
 0xbda   :  { %2620 = vmatpush3.bf16.msra.mxu1 %v2617_v60 }
 0xbdb   :  { %2622 = vmatprep.subr.bf16.mxu1 %v2621_v18 }
 0xbde   :  { %2624 = vmatpush3.bf16.msra.mxu1 %v2621_v18 }
 0xbdf   :  { %2626 = vmatprep.subr.bf16.mxu1 %v2625_v26 }
 0xbe2   :  { %2628 = vmatpush3.bf16.msra.mxu1 %v2625_v26 }
 0xbe3   :  { %2630 = vmatprep.subr.bf16.mxu1 %v2629_v5 }
 0xbe6   :  { %2632 = vmatpush3.bf16.msra.mxu1 %v2629_v5 }
 0xcac   :  { %v2510_v28 = vpop.f32.mrb[14].mxu1 }
 0xcad   :  { %v1963_v30 = vadd.f32 %v2510_v28, %v2256_v27  ;;  %v1957_v4 = vpop.f32.mrb[15].mxu1 }
 0xcae   :  { %v1958_v8 = vadd.f32 %v2256_v27, %v1957_v4 }
 0xcaf   :  { %v1967_v10 = vmax.f32 %v1963_v30, 0.0 }
 0xcb0   :  { %v1966_v31 = vmax.f32 %v1958_v8, 0.0 }
 0xcb2   :  { %2527 = vmatprep.mubr.msk.f32.mxu1 %vm1972_vm1, %v1966_v31 }
 0xcb3   :  { %2528 = vmatmul.mubr.msk.f32.vlgmr.msra.gmra.mrb[16].mxu1 %vm1972_vm1, %v1967_v10 }
 0xd86   :  { %v2529_v33 = vpop.f32.mrb[16].mxu1 }
 0xd87   :  { %v2051_v34 = vadd.f32 %v2529_v33, %v2259_v54  ;;  %v2045_v37 = vpop.f32.mrb[17].mxu1 }
 0xd88   :  { %v2046_v38 = vadd.f32 %v2259_v54, %v2045_v37 }
 0xd89   :  { %v2055_v40 = vadd.f32 %v2051_v34, %v1868_v16 }
 0xd8a   :  { %v2054_v42 = vadd.f32 %v2046_v38, %v1867_v14 }
 0xd8b   :  { %v2061_v43 = vsel %vm339_vm2, %v2055_v40, 0.0 }
 0xd8c   :  { %2062 = vadd.xlane.f32.xlu0 %v2061_v43  ;;  %v2058_v44 = vsel %vm339_vm2, %v2054_v42, 0.0 }
 0xd8d   :  { %2059 = vadd.xlane.f32.xlu1 %v2058_v44 }
 0xe19   :  { %v2063_v45 = vpop.xlane.xlu0 %2062 }
 0xe1a   :  { %v2065_v46 = vmul.f32 0.0625, %v2063_v45  ;;  %v2060_v47 = vpop.xlane.xlu1 %2059 }
 0xe1b   :  { %v2064_v48 = vmul.f32 0.0625, %v2060_v47 }
 0xe1c   :  { %v2067_v32 = vsub.f32 %v2055_v40, %v2065_v46 }
 0xe1d   :  { %v2066_v39 = vsub.f32 %v2054_v42, %v2064_v48 }
 0xe1e   :  { %v2069_v35 = vmul.f32 %v2067_v32, %v2067_v32 }
 0xe1f   :  { %v2068_v49 = vmul.f32 %v2066_v39, %v2066_v39 }
 0xe20   :  { %v2073_v50 = vsel %vm339_vm2, %v2069_v35, 0.0 }
 0xe21   :  { %2074 = vadd.xlane.f32.xlu0 %v2073_v50  ;;  %v2070_v20 = vsel %vm339_vm2, %v2068_v49, 0.0 }
 0xe22   :  { %2071 = vadd.xlane.f32.xlu1 %v2070_v20 }
 0xeae   :  { %v2075_v52 = vpop.xlane.xlu0 %2074 }
 0xeaf   :  { %v2077_v55 = vmul.f32 0.0625, %v2075_v52  ;;  %v2072_v56 = vpop.xlane.xlu1 %2071 }
 0xeb0   :  { %v2076_v19 = vmul.f32 0.0625, %v2072_v56 }
 0xeb1   :  { %v2079_v21 = vadd.f32 1e-06, %v2077_v55 }
 0xeb2   :  { %v2078_v41 = vadd.f32 1e-06, %v2076_v19 }
 0xeb3   :  { %2703 = vrsqrt.f32 %v2079_v21 }
 0xeb4   :  { %2705 = vrsqrt.f32 %v2078_v41 }
 0xebd   :  { %v2704_v57 = vpop.eup %2703 }
 0xebe   :  { %v2706_v59 = vpop.eup %2705  ;;  %v2083_v60 = vmul.f32 %v2704_v57, %v2067_v32 }
 0xebf   :  { %v2082_v15 = vmul.f32 %v2706_v59, %v2066_v39 }
 0xec0   :  { %v2089_v62 = vmul.f32 %v2262_v58, %v2083_v60 }
 0xec1   :  { %v2088_v63 = vmul.f32 %v2262_v58, %v2082_v15 }
 0xec2   :  { %v2095_v1 = vadd.f32 %v2263_v61, %v2089_v62 }
 0xec3   :  { %v2094_v0 = vadd.f32 %v2263_v61, %v2088_v63 }
 0xec5   :  { %2534 = vmatprep.mubr.msk.f32.mxu0 %vm339_vm2, %v2094_v0 }
 0xec6   :  { %2535 = vmatmul.mubr.msk.f32.vlgmr.msra.gmra.mrb[16].mxu0 %vm339_vm2, %v2095_v1 }
 0xf99   :  { %v2536_v3 = vpop.f32.mrb[16].mxu0 }
 0xf9a   :  { %v2181_v6 = vadd.f32 %v2536_v3, %v2264_v2  ;;  %v2175_v7 = vpop.f32.mrb[17].mxu0 }
 0xf9b   :  { %v2176_v17 = vadd.f32 %v2264_v2, %v2175_v7 }
 0xf9c   :  { %2185 = vst [vmem:[%s3159_s3 + $0x8] sm:$0xff] %v2181_v6 }
 0xf9d   :  { %2184 = vst [vmem:[%s3159_s3] sm:$0xff] %v2176_v17 }

</bundles_post_ra>
